<compile_context>
chip_gen: v7x
topology: tpu7x:2x2x1
jax: 0.10.0
libtpu: 0.0.40
codegen_flags: <defaults>
</compile_context>

<pallas_src>
import functools

import jax
import jax.numpy as jnp
from jax.experimental import pallas as pl
from jax.experimental.pallas import tpu as pltpu

PATCH = 16
EMBED = 1024        # ViT-L embed dim / nn.Linear(1024, ...) dims
MLP_HIDDEN = 1024   # linear_cl hidden
CLS_HIDDEN = 512    # classify hidden
NUM_DOMAINS = 8     # classify output
CLS_OUT_PAD = 128   # lane-dense padded classifier output

MAX_ROW_TILE = 512  # row tile for linear / mlp2 (multiple of 8, fits VMEM w/ 2x buffering)


def _row_tile(m, cap=MAX_ROW_TILE):
    # Full extent when small (always legal), otherwise a multiple-of-8 tile.
    return m if m <= cap else cap


def _token_tile(n_padded):
    # n_padded is a multiple of 8; pick the largest tile in {128,...,8} dividing it.
    for t in (128, 64, 32, 16, 8):
        if n_padded % t == 0:
            return t
    return n_padded


# ----------------------------------------------------------------------------
# Kernel 1: single Linear (patch-embedding projection, bias add), rows tiled.
# ----------------------------------------------------------------------------
def _linear_kernel(x_ref, w_ref, b_ref, o_ref):
    x = x_ref[...].astype(jnp.bfloat16)
    o_ref[...] = (
        jnp.dot(x, w_ref[...], preferred_element_type=jnp.float32) + b_ref[...]
    ).astype(o_ref.dtype)


def linear_pallas(x, w, b):
    M, Din = x.shape
    Dout = w.shape[1]
    TM = _row_tile(M)
    return pl.pallas_call(
        _linear_kernel,
        out_shape=jax.ShapeDtypeStruct((M, Dout), jnp.float32),
        grid=(pl.cdiv(M, TM),),
        in_specs=[
            pl.BlockSpec((TM, Din), lambda i: (i, 0)),
            pl.BlockSpec((Din, Dout), lambda i: (0, 0)),   # resident across steps
            pl.BlockSpec((1, Dout), lambda i: (0, 0)),
        ],
        out_specs=pl.BlockSpec((TM, Dout), lambda i: (i, 0)),
        compiler_params=pltpu.CompilerParams(dimension_semantics=("parallel",)),
    )(x, w, b)


# ----------------------------------------------------------------------------
# Kernel 2: Linear -> ReLU -> Linear (linear_cl applied per token), rows tiled.
# ----------------------------------------------------------------------------
def _mlp2_kernel(x_ref, w1_ref, b1_ref, w2_ref, b2_ref, o_ref):
    x = x_ref[...].astype(jnp.bfloat16)
    h = jnp.dot(x, w1_ref[...], preferred_element_type=jnp.float32) + b1_ref[...]
    h = jnp.maximum(h, 0.0).astype(jnp.bfloat16)
    o_ref[...] = (
        jnp.dot(h, w2_ref[...], preferred_element_type=jnp.float32) + b2_ref[...]
    ).astype(o_ref.dtype)


def mlp2_pallas(x, w1, b1, w2, b2):
    M, Din = x.shape
    H = w1.shape[1]
    Dout = w2.shape[1]
    TM = _row_tile(M)
    return pl.pallas_call(
        _mlp2_kernel,
        out_shape=jax.ShapeDtypeStruct((M, Dout), jnp.float32),
        grid=(pl.cdiv(M, TM),),
        in_specs=[
            pl.BlockSpec((TM, Din), lambda i: (i, 0)),
            pl.BlockSpec((Din, H), lambda i: (0, 0)),
            pl.BlockSpec((1, H), lambda i: (0, 0)),
            pl.BlockSpec((H, Dout), lambda i: (0, 0)),
            pl.BlockSpec((1, Dout), lambda i: (0, 0)),
        ],
        out_specs=pl.BlockSpec((TM, Dout), lambda i: (i, 0)),
        compiler_params=pltpu.CompilerParams(dimension_semantics=("parallel",)),
    )(x, w1, b1, w2, b2)


# ----------------------------------------------------------------------------
# Kernel 3: fused pooled heads with streaming mean over the token axis.
#   tokens (BB, N, D) -> mean over N (accumulated tile-by-tile in VMEM)
#                     -> linear_cl MLP -> feat (BB, 1024)
#                     -> classify MLP  -> dom  (BB, 128 padded; slice to 8 outside)
# (GradientReversal is identity in forward.)
# ----------------------------------------------------------------------------
def _pooled_heads_kernel(tok_ref, w1_ref, b1_ref, w2_ref, b2_ref,
                         wc1_ref, bc1_ref, wc2_ref, bc2_ref,
                         feat_ref, dom_ref, acc_ref, *, inv_n):
    kn = pl.program_id(0)

    @pl.when(kn == 0)
    def _():
        acc_ref[...] = jnp.zeros_like(acc_ref)

    # Accumulate token sum for this tile of the token axis.
    acc_ref[...] += jnp.sum(tok_ref[...], axis=1)

    @pl.when(kn == pl.num_programs(0) - 1)
    def _():
        m = (acc_ref[...] * inv_n).astype(jnp.bfloat16)   # (BB, D) token mean

        # linear_cl head: Linear(1024,1024) -> ReLU -> Linear(1024,1024)
        h = jnp.maximum(
            jnp.dot(m, w1_ref[...], preferred_element_type=jnp.float32) + b1_ref[...],
            0.0).astype(jnp.bfloat16)
        feat_ref[...] = (
            jnp.dot(h, w2_ref[...], preferred_element_type=jnp.float32) + b2_ref[...]
        ).astype(feat_ref.dtype)

        # classify head: GRL(identity fwd) -> Linear(1024,512) -> ReLU -> Linear(512,128 padded)
        hc = jnp.maximum(
            jnp.dot(m, wc1_ref[...], preferred_element_type=jnp.float32) + bc1_ref[...],
            0.0).astype(jnp.bfloat16)
        dom_ref[...] = (
            jnp.dot(hc, wc2_ref[...], preferred_element_type=jnp.float32) + bc2_ref[...]
        ).astype(dom_ref.dtype)


def pooled_heads_pallas(tokens, w1, b1, w2, b2, wc1, bc1, wc2p, bc2p):
    BB, N, D = tokens.shape
    n_true = N

    # Pad the token axis with zeros to a multiple of 8 (zeros don't change the sum).
    pad = (-N) % 8
    if pad:
        tokens = jnp.pad(tokens, ((0, 0), (0, pad), (0, 0)))
    Np = N + pad
    TN = _token_tile(Np)

    H = w1.shape[1]
    Dout = w2.shape[1]
    Hc = wc1.shape[1]
    DcP = wc2p.shape[1]

    kernel = functools.partial(_pooled_heads_kernel, inv_n=1.0 / float(n_true))

    return pl.pallas_call(
        kernel,
        out_shape=(jax.ShapeDtypeStruct((BB, Dout), jnp.float32),
                   jax.ShapeDtypeStruct((BB, DcP), jnp.float32)),
        grid=(Np // TN,),
        in_specs=[
            pl.BlockSpec((BB, TN, D), lambda n: (0, n, 0)),
            pl.BlockSpec((D, H), lambda n: (0, 0)),
            pl.BlockSpec((1, H), lambda n: (0, 0)),
            pl.BlockSpec((H, Dout), lambda n: (0, 0)),
            pl.BlockSpec((1, Dout), lambda n: (0, 0)),
            pl.BlockSpec((D, Hc), lambda n: (0, 0)),
            pl.BlockSpec((1, Hc), lambda n: (0, 0)),
            pl.BlockSpec((Hc, DcP), lambda n: (0, 0)),
            pl.BlockSpec((1, DcP), lambda n: (0, 0)),
        ],
        out_specs=(pl.BlockSpec((BB, Dout), lambda n: (0, 0)),
                   pl.BlockSpec((BB, DcP), lambda n: (0, 0))),
        scratch_shapes=[pltpu.VMEM((BB, D), jnp.float32)],
        compiler_params=pltpu.CompilerParams(dimension_semantics=("arbitrary",)),
    )(tokens, w1, b1, w2, b2, wc1, bc1, wc2p, bc2p)


# ----------------------------------------------------------------------------
# Glue
# ----------------------------------------------------------------------------
def patchify(x):
    """NCHW image -> (B*N, C*PATCH*PATCH) rows, (C, kh, kw) flattening order."""
    B, C, H, W = x.shape
    nh, nw = H // PATCH, W // PATCH
    x = x.reshape(B, C, nh, PATCH, nw, PATCH)
    x = x.transpose(0, 2, 4, 1, 3, 5)               # (B, nh, nw, C, ph, pw)
    return x.reshape(B * nh * nw, C * PATCH * PATCH), nh * nw


def init_params(key, in_chans=3):
    ks = jax.random.split(key, 5)

    def dense(k, fan_in, fan_out):
        # Weights stored bf16 for MXU throughput; accumulation stays f32.
        return (jax.random.normal(k, (fan_in, fan_out), jnp.float32) * 0.02
                ).astype(jnp.bfloat16)

    cls2_w = dense(ks[4], CLS_HIDDEN, NUM_DOMAINS)
    cls2_w_pad = jnp.zeros((CLS_HIDDEN, CLS_OUT_PAD), jnp.bfloat16
                           ).at[:, :NUM_DOMAINS].set(cls2_w)
    cls2_b_pad = jnp.zeros((1, CLS_OUT_PAD), jnp.float32)

    return {
        # backbone patch embedding (stand-in for swin_cl == swin_cb)
        "patch_w": dense(ks[0], in_chans * PATCH * PATCH, EMBED),
        "patch_b": jnp.zeros((1, EMBED), jnp.float32),
        # linear_cl: Linear(1024,1024) -> ReLU -> Linear(1024,1024)
        "lin1_w": dense(ks[1], EMBED, MLP_HIDDEN),
        "lin1_b": jnp.zeros((1, MLP_HIDDEN), jnp.float32),
        "lin2_w": dense(ks[2], MLP_HIDDEN, EMBED),
        "lin2_b": jnp.zeros((1, EMBED), jnp.float32),
        # classify: GRL -> Linear(1024,512) -> ReLU -> Linear(512,8) (padded to 128 lanes)
        "cls1_w": dense(ks[3], EMBED, CLS_HIDDEN),
        "cls1_b": jnp.zeros((1, CLS_HIDDEN), jnp.float32),
        "cls2_w_pad": cls2_w_pad,
        "cls2_b_pad": cls2_b_pad,
    }


def swin_domain_agnostic_forward(params, x_cl, x_cb):
    B = x_cl.shape[0]

    # --- concatenate both streams so every kernel stage is a single call ---
    x_all = jnp.concatenate([x_cl, x_cb], axis=0)                 # (2B, C, H, W)
    patches, N = patchify(x_all)
    patches = patches.astype(jnp.bfloat16)                        # halve HBM traffic

    # --- backbone (shared weights, swin_cb = swin_cl): tokens (2B, N, 1024) ---
    tokens = linear_pallas(patches, params["patch_w"], params["patch_b"])
    tokens = tokens.reshape(2 * B, N, EMBED)
    x_cl_tokens, x_cb_tokens = tokens[:B], tokens[B:]

    # --- pooled path: streamed mean over tokens -> linear_cl MLP + classifier ---
    feat, dom = pooled_heads_pallas(
        tokens,
        params["lin1_w"], params["lin1_b"], params["lin2_w"], params["lin2_b"],
        params["cls1_w"], params["cls1_b"], params["cls2_w_pad"], params["cls2_b_pad"])
    dom = dom[:, :NUM_DOMAINS]                                    # un-pad classifier
    x_cl_feat, x_cb_feat = feat[:B], feat[B:]
    domain_class_cl, domain_class_cb = dom[:B], dom[B:]

    # --- per-token linear_cl (computed in the reference forward but unused) ---
    _tokens_transformed = mlp2_pallas(
        tokens.reshape(2 * B * N, EMBED),
        params["lin1_w"], params["lin1_b"], params["lin2_w"], params["lin2_b"])

    # matches the reference return tuple exactly
    return (x_cl_feat, x_cb_feat, x_cl_tokens, x_cb_tokens,
            domain_class_cl, domain_class_cb)


if __name__ == "__main__":
    key = jax.random.PRNGKey(0)
    kp, k1, k2 = jax.random.split(key, 3)
    params = init_params(kp)

    # small shapes: B=2, C=3, 32x32 images -> N = (32/16)^2 = 4 tokens of dim 1024
    x_cl = jax.random.normal(k1, (2, 3, 32, 32), jnp.float32)
    x_cb = jax.random.normal(k2, (2, 3, 32, 32), jnp.float32)

    out = swin_domain_agnostic_forward(params, x_cl, x_cb)
    jax.block_until_ready(out)

    assert out[0].shape == (2, EMBED)
    assert out[1].shape == (2, EMBED)
    assert out[2].shape == (2, 4, EMBED)
    assert out[3].shape == (2, 4, EMBED)
    assert out[4].shape == (2, NUM_DOMAINS)
    assert out[5].shape == (2, NUM_DOMAINS)
    print("KERNEL_OK")
</pallas_src>

<mosaic_0001>
module attributes {stable_mosaic.version = 11 : i64} {
  func.func @_linear_kernel(%arg0: i32, %arg1: memref<16x768xbf16, #tpu.memory_space<vmem>>, %arg2: memref<768x1024xbf16, #tpu.memory_space<vmem>>, %arg3: memref<1x1024xf32, #tpu.memory_space<vmem>>, %arg4: memref<16x1024xf32, #tpu.memory_space<vmem>>) attributes {dimension_semantics = [#tpu.dimension_semantics<parallel>], iteration_bounds = array<i64: 1>, scalar_prefetch = 0 : i64, scratch_operands = 0 : i64, tpu.core_type = #tpu.core_type<tc>, window_params = [{transform_indices = @transform_0, window_bounds = array<i64: 16, 768>}, {pipeline_mode = #tpu.pipeline_mode<synchronous>, transform_indices = @transform_1, window_bounds = array<i64: 768, 1024>}, {pipeline_mode = #tpu.pipeline_mode<synchronous>, transform_indices = @transform_2, window_bounds = array<i64: 1, 1024>}, {transform_indices = @transform_3, window_bounds = array<i64: 16, 1024>}]} {
    %c0 = arith.constant 0 : index
    %c0_0 = arith.constant 0 : index
    %0 = vector.load %arg1[%c0, %c0_0] : memref<16x768xbf16, #tpu.memory_space<vmem>>, vector<16x768xbf16>
    %c0_1 = arith.constant 0 : index
    %c0_2 = arith.constant 0 : index
    %1 = vector.load %arg2[%c0_1, %c0_2] : memref<768x1024xbf16, #tpu.memory_space<vmem>>, vector<768x1024xbf16>
    %cst = arith.constant dense<0.000000e+00> : vector<16x1024xf32>
    %2 = tpu.matmul %0, %1, %cst {dimension_numbers = #tpu.dot_dimension_numbers<[1], [0], [0], [1], [0, 0, 1, 1], [], []>} : vector<16x768xbf16>, vector<768x1024xbf16>, vector<16x1024xf32> -> vector<16x1024xf32>
    %c0_3 = arith.constant 0 : index
    %c0_4 = arith.constant 0 : index
    %3 = vector.load %arg3[%c0_3, %c0_4] : memref<1x1024xf32, #tpu.memory_space<vmem>>, vector<1x1024xf32>
    %4 = vector.broadcast %3 : vector<1x1024xf32> to vector<16x1024xf32>
    %5 = arith.addf %2, %4 : vector<16x1024xf32>
    %c0_5 = arith.constant 0 : index
    %c0_6 = arith.constant 0 : index
    %6 = vector.load %arg4[%c0_5, %c0_6] : memref<16x1024xf32, #tpu.memory_space<vmem>>, vector<16x1024xf32>
    tpu.vector_store %arg4[%c0_5, %c0_6], %5 {strides = array<i32>} : memref<16x1024xf32, #tpu.memory_space<vmem>>, vector<16x1024xf32>,
    return
  }
  func.func @transform_0(%arg0: i32) -> (i32, i32) {
    %c0_i32 = arith.constant 0 : i32
    %c0_i32_0 = arith.constant 0 : i32
    return %arg0, %c0_i32 : i32, i32
  }
  func.func @transform_1(%arg0: i32) -> (i32, i32) {
    %c0_i32 = arith.constant 0 : i32
    %c0_i32_0 = arith.constant 0 : i32
    %c0_i32_1 = arith.constant 0 : i32
    return %c0_i32, %c0_i32_0 : i32, i32
  }
  func.func @transform_2(%arg0: i32) -> (i32, i32) {
    %c0_i32 = arith.constant 0 : i32
    %c0_i32_0 = arith.constant 0 : i32
    %c0_i32_1 = arith.constant 0 : i32
    return %c0_i32, %c0_i32_0 : i32, i32
  }
  func.func @transform_3(%arg0: i32) -> (i32, i32) {
    %c0_i32 = arith.constant 0 : i32
    %c0_i32_0 = arith.constant 0 : i32
    return %arg0, %c0_i32 : i32, i32
  }
}

</mosaic_0001>

<bundles_post_ra>
// kernel: tpu_custom_call.1
= control target key start
LH: loop header
LB: loop body
LE: loop exit
PB: predicated region body
PF: predicated region fallthrough
CT: control target
= control target key end

     0   :  { %8 = vsyncpa [#allocation3], 0  ;;  %s3621_s0 = inlined_call_operand.hbm [shape: bf16[16,768], index: 0, kind: input, shape index: {}]   ;;  %s3622_s1 = inlined_call_operand.hbm [shape: bf16[768,1024], index: 1, kind: input, shape index: {}]   ;;  %s3623_s2 = inlined_call_operand.hbm [shape: f32[1,1024], index: 2, kind: input, shape index: {}]   ;;  %s3624_s3 = inlined_call_operand.hbm [shape: f32[16,1024], index: 3, kind: output, shape index: {}]  }
   0x1   :  { %9 = vsyncpa [#allocation6], 0 }
   0x2   :  { %10 = vsyncpa [#allocation4], 0  ;;  %s3543_s12 = smov [#allocation5]   ;;  %s3449_s16 = scalar_lea.hbm %s3622_s1, 49152 }
   0x3   :  { %s28_s13 = sshll.u32 %s3543_s12, 4  ;;  %p3450_p0 = scmp.ne.s32.totalorder %s3622_s1, %s3449_s16  ;;  %s29_s13 = int_to_ptr.vmem [resolvable:$true] %s28_s13 }
   0x4   :  { %p3453_p1 = scmp.lt.u32.totalorder %s3449_s16, %s3622_s1 }
   0x6   :  { %p3455_p2 = pnand %p3453_p1, %p3450_p0 }
   0x8   :  { %3458 = shalt.err (!%p3455_p2)
}
   0x9   :  { %s3459_s21 = scalar_lea.vmem %s29_s13, 49152  ;;  %p3464_p4 = scmp.lt.s32.totalorder %s29_s13, %s29_s13 }
   0xa   :  { %p3460_p3 = scmp.ne.s32.totalorder %s29_s13, %s3459_s21  ;;  %p3465_p5 = scmp.lt.s32.totalorder %s3459_s21, %s3459_s21 }
   0xc   :  { %p3466_p6 = por %p3465_p5, %p3464_p4 }
   0xe   :  { %p3467_p7 = pnand %p3466_p6, %p3460_p3 }
  0x10   :  { %3470 = shalt.err (!%p3467_p7)
}
  0x11   :  { %s3544_s22 = smov 512   ;;  %s3545_s23 = smov 32  }
  0x12   :  { %34 = dma.hbm_to_vmem [thread:$0]  %s3622_s1, 49152, %s29_s13, [#allocation6], %s3544_s22, %s3544_s22, %s3545_s23  }
  0x13   :  { %s3546_s26 = smov [#allocation2]   ;;  %s3471_s30 = scalar_lea.hbm %s3621_s0, 768 }
  0x14   :  { %s16_s27 = sshll.u32 %s3546_s26, 4  ;;  %p3472_p8 = scmp.ne.s32.totalorder %s3621_s0, %s3471_s30  ;;  %s17_s27 = int_to_ptr.vmem [resolvable:$true] %s16_s27 }
  0x15   :  { %p3475_p9 = scmp.lt.u32.totalorder %s3471_s30, %s3621_s0 }
  0x17   :  { %p3477_p10 = pnand %p3475_p9, %p3472_p8 }
  0x19   :  { %3480 = shalt.err (!%p3477_p10)
}
  0x1a   :  { %s3481_s8 = scalar_lea.vmem %s17_s27, 768  ;;  %p3486_p12 = scmp.lt.s32.totalorder %s17_s27, %s17_s27 }
  0x1b   :  { %p3482_p11 = scmp.ne.s32.totalorder %s17_s27, %s3481_s8  ;;  %p3487_p13 = scmp.lt.s32.totalorder %s3481_s8, %s3481_s8 }
  0x1d   :  { %p3488_p0 = por %p3487_p13, %p3486_p12 }
  0x1f   :  { %p3489_p1 = pnand %p3488_p0, %p3482_p11 }
  0x21   :  { %3492 = shalt.err (!%p3489_p1)
}
  0x22   :  { %s3547_s1 = smov 384   ;;  %s3548_s9 = smov 24  }
  0x23   :  { %22 = dma.hbm_to_vmem [thread:$0]  %s3621_s0, 768, %s17_s27, [#allocation3], %s3547_s1, %s3547_s1, %s3548_s9  }
  0x24   :  { %s3549_s12 = smov [#allocation7]   ;;  %s3493_s16 = scalar_lea.hbm %s3623_s2, 128 }
  0x25   :  { %s41_s13 = sshll.u32 %s3549_s12, 4  ;;  %p3494_p2 = scmp.ne.s32.totalorder %s3623_s2, %s3493_s16  ;;  %s42_s13 = int_to_ptr.vmem [resolvable:$true] %s41_s13 }
  0x26   :  { %p3497_p3 = scmp.lt.u32.totalorder %s3493_s16, %s3623_s2 }
  0x28   :  { %p3499_p4 = pnand %p3497_p3, %p3494_p2 }
  0x2a   :  { %3502 = shalt.err (!%p3499_p4)
}
  0x2b   :  { %s3503_s21 = scalar_lea.vmem %s42_s13, 128  ;;  %p3508_p6 = scmp.lt.s32.totalorder %s42_s13, %s42_s13 }
  0x2c   :  { %p3504_p5 = scmp.ne.s32.totalorder %s42_s13, %s3503_s21  ;;  %p3509_p7 = scmp.lt.s32.totalorder %s3503_s21, %s3503_s21 }
  0x2e   :  { %p3510_p8 = por %p3509_p7, %p3508_p6 }
  0x30   :  { %p3511_p9 = pnand %p3510_p8, %p3504_p5 }
  0x32   :  { %3514 = shalt.err (!%p3511_p9)
}
  0x33   :  { %44 = dma.hbm_to_vmem [thread:$0]  %s3623_s2, 128, %s42_s13, [#allocation6]  }
  0x34   :  { %3537 = dma.done.wait [#allocation3], 768  }
  0x35   :  { %3538 = vsyncadd [#allocation3], 4294966528 }
  0x36   :  { %3539 = dma.done.wait [#allocation6], 49280  }
  0x37   :  { %3540 = vsyncadd [#allocation6], 4294918016  ;;  %v60_v0 = vld [vmem:[#allocation5] sm:$0xff]  ;;  %v61_v2 = vld [vmem:[#allocation5 + $0x8] sm:$0xff]  ;;  %s3550_s2 = smov [#allocation8]  }
  0x38   :  { %v64_v1 = vld [vmem:[#allocation5 + $0x20] sm:$0xff]  ;;  %v65_v4 = vld [vmem:[#allocation5 + $0x28] sm:$0xff]  ;;  %s2973_s23 = sshll.u32 %s3550_s2, 4  ;;  %s2974_s23 = int_to_ptr.vmem [resolvable:$true] %s2973_s23 }
  0x39   :  { %v2993_v3 = vcombine.high %v60_v0, %v64_v1  ;;  %v2992_v5 = vcombine.low %v60_v0, %v64_v1  ;;  %v68_v6 = vld [vmem:[#allocation5 + $0x40] sm:$0xff]  ;;  %v2995_v8 = vcombine.high %v61_v2, %v65_v4  ;;  %v2994_v9 = vcombine.low %v61_v2, %v65_v4  ;;  %v69_v11 = vld [vmem:[#allocation5 + $0x48] sm:$0xff]  ;;  %s3515_s24 = scalar_lea.vmem %s2974_s23, 2048  ;;  %p3520_p11 = scmp.lt.s32.totalorder %s2974_s23, %s2974_s23 }
  0x3a   :  { %v72_v7 = vld [vmem:[#allocation5 + $0x60] sm:$0xff]  ;;  %v73_v12 = vld [vmem:[#allocation5 + $0x68] sm:$0xff]  ;;  %p3516_p10 = scmp.ne.s32.totalorder %s2974_s23, %s3515_s24  ;;  %p3521_p12 = scmp.lt.s32.totalorder %s3515_s24, %s3515_s24 }
  0x3b   :  { %v3001_v10 = vcombine.high %v68_v6, %v72_v7  ;;  %v76_v13 = vld [vmem:[#allocation5 + $0x80] sm:$0xff]  ;;  %2436 = vmatprep.subr.bf16.mxu0 %v2993_v3  ;;  %v3003_v14 = vcombine.high %v69_v11, %v73_v12  ;;  %v77_v16 = vld [vmem:[#allocation5 + $0x88] sm:$0xff]  ;;  %2565 = vmatprep.subr.bf16.mxu1 %v2995_v8  ;;  %v3000_v18 = vcombine.low %v68_v6, %v72_v7 }
  0x3c   :  { %v80_v15 = vld [vmem:[#allocation5 + $0xa0] sm:$0xff]  ;;  %v81_v17 = vld [vmem:[#allocation5 + $0xa8] sm:$0xff]  ;;  %2437 = vmatpush1.bf16.msra.mxu0 %v2992_v5  ;;  %2566 = vmatpush1.bf16.msra.mxu1 %v2994_v9  ;;  %v3002_v19 = vcombine.low %v69_v11, %v73_v12  ;;  %p3522_p13 = por %p3521_p12, %p3520_p11 }
  0x3d   :  { %2438 = vmatprep.subr.bf16.mxu0 %v3001_v10  ;;  %v3009_v20 = vcombine.high %v76_v13, %v80_v15  ;;  %2567 = vmatprep.subr.bf16.mxu1 %v3003_v14  ;;  %v3011_v21 = vcombine.high %v77_v16, %v81_v17  ;;  %v84_v22 = vld [vmem:[#allocation5 + $0xc0] sm:$0xff]  ;;  %v85_v24 = vld [vmem:[#allocation5 + $0xc8] sm:$0xff]  ;;  %v3008_v26 = vcombine.low %v76_v13, %v80_v15 }
  0x3e   :  { %v88_v23 = vld [vmem:[#allocation5 + $0xe0] sm:$0xff]  ;;  %v89_v25 = vld [vmem:[#allocation5 + $0xe8] sm:$0xff]  ;;  %v3010_v27 = vcombine.low %v77_v16, %v81_v17  ;;  %p3523_p0 = pnand %p3522_p13, %p3516_p10 }
  0x3f   :  { %v3017_v28 = vcombine.high %v84_v22, %v88_v23  ;;  %v3019_v29 = vcombine.high %v85_v24, %v89_v25  ;;  %v92_v30 = vld [vmem:[#allocation5 + $0x100] sm:$0xff]  ;;  %v93_v32 = vld [vmem:[#allocation5 + $0x108] sm:$0xff]  ;;  %v3016_v34 = vcombine.low %v84_v22, %v88_v23  ;;  %v3018_v35 = vcombine.low %v85_v24, %v89_v25 }
  0x40   :  { %2439 = vmatpush1.bf16.msra.mxu0 %v3000_v18  ;;  %2568 = vmatpush1.bf16.msra.mxu1 %v3002_v19  ;;  %v96_v31 = vld [vmem:[#allocation5 + $0x120] sm:$0xff]  ;;  %v97_v33 = vld [vmem:[#allocation5 + $0x128] sm:$0xff] }
  0x41   :  { %2440 = vmatprep.subr.bf16.mxu0 %v3009_v20  ;;  %2569 = vmatprep.subr.bf16.mxu1 %v3011_v21  ;;  %v3025_v36 = vcombine.high %v92_v30, %v96_v31  ;;  %v3027_v37 = vcombine.high %v93_v32, %v97_v33  ;;  %v100_v38 = vld [vmem:[#allocation5 + $0x140] sm:$0xff]  ;;  %v101_v40 = vld [vmem:[#allocation5 + $0x148] sm:$0xff]  ;;  %v3024_v42 = vcombine.low %v92_v30, %v96_v31 }
  0x42   :  { %v104_v39 = vld [vmem:[#allocation5 + $0x160] sm:$0xff]  ;;  %v105_v41 = vld [vmem:[#allocation5 + $0x168] sm:$0xff]  ;;  %v3026_v43 = vcombine.low %v93_v32, %v97_v33 }
  0x43   :  { %v3033_v44 = vcombine.high %v100_v38, %v104_v39  ;;  %v3035_v45 = vcombine.high %v101_v40, %v105_v41  ;;  %v108_v46 = vld [vmem:[#allocation5 + $0x180] sm:$0xff]  ;;  %v109_v48 = vld [vmem:[#allocation5 + $0x188] sm:$0xff]  ;;  %v3032_v50 = vcombine.low %v100_v38, %v104_v39  ;;  %v3034_v51 = vcombine.low %v101_v40, %v105_v41 }
  0x44   :  { %2441 = vmatpush1.bf16.msra.mxu0 %v3008_v26  ;;  %2570 = vmatpush1.bf16.msra.mxu1 %v3010_v27  ;;  %v112_v47 = vld [vmem:[#allocation5 + $0x1a0] sm:$0xff]  ;;  %v113_v49 = vld [vmem:[#allocation5 + $0x1a8] sm:$0xff] }
  0x45   :  { %2442 = vmatprep.subr.bf16.mxu0 %v3017_v28  ;;  %2571 = vmatprep.subr.bf16.mxu1 %v3019_v29  ;;  %v3041_v52 = vcombine.high %v108_v46, %v112_v47  ;;  %v3043_v53 = vcombine.high %v109_v48, %v113_v49  ;;  %v116_v54 = vld [vmem:[#allocation5 + $0x1c0] sm:$0xff]  ;;  %v3434_v56 = vld [vmem:[#allocation2 + $0x4] ss:$24 sps:$4 sm:$0xff]   ;;  %v3040_v59 = vcombine.low %v108_v46, %v112_v47 }
  0x46   :  { %v120_v55 = vld [vmem:[#allocation5 + $0x1e0] sm:$0xff]  ;;  %v117_v57 = vld [vmem:[#allocation5 + $0x1c8] sm:$0xff]  ;;  %2468 = vmatprep.mubr.bf16.mxu0 %v3434_v56  ;;  %v3042_v60 = vcombine.low %v109_v48, %v113_v49  ;;  %2597 = vmatprep.mubr.bf16.mxu1 %v3434_v56 }
  0x47   :  { %v121_v58 = vld [vmem:[#allocation5 + $0x1e8] sm:$0xff]  ;;  %v3049_v61 = vcombine.high %v116_v54, %v120_v55  ;;  %v124_v63 = vld [vmem:[#allocation5 + $0x200] sm:$0xff]  ;;  %v3048_v3 = vcombine.low %v116_v54, %v120_v55 }
  0x48   :  { %2443 = vmatpush1.bf16.msra.mxu0 %v3016_v34  ;;  %2572 = vmatpush1.bf16.msra.mxu1 %v3018_v35  ;;  %v3051_v62 = vcombine.high %v117_v57, %v121_v58  ;;  %v128_v0 = vld [vmem:[#allocation5 + $0x220] sm:$0xff]  ;;  %v125_v1 = vld [vmem:[#allocation5 + $0x208] sm:$0xff]  ;;  %v3050_v4 = vcombine.low %v117_v57, %v121_v58 }
  0x49   :  { %2444 = vmatprep.subr.bf16.mxu0 %v3025_v36  ;;  %2573 = vmatprep.subr.bf16.mxu1 %v3027_v37  ;;  %v129_v2 = vld [vmem:[#allocation5 + $0x228] sm:$0xff]  ;;  %v3057_v5 = vcombine.high %v124_v63, %v128_v0  ;;  %v132_v7 = vld [vmem:[#allocation5 + $0x240] sm:$0xff]  ;;  %v3056_v11 = vcombine.low %v124_v63, %v128_v0 }
  0x4a   :  { %v3059_v6 = vcombine.high %v125_v1, %v129_v2  ;;  %v136_v8 = vld [vmem:[#allocation5 + $0x260] sm:$0xff]  ;;  %v133_v9 = vld [vmem:[#allocation5 + $0x248] sm:$0xff]  ;;  %v3058_v12 = vcombine.low %v125_v1, %v129_v2 }
  0x4b   :  { %v137_v10 = vld [vmem:[#allocation5 + $0x268] sm:$0xff]  ;;  %v3065_v13 = vcombine.high %v132_v7, %v136_v8  ;;  %v140_v15 = vld [vmem:[#allocation5 + $0x280] sm:$0xff]  ;;  %v3064_v19 = vcombine.low %v132_v7, %v136_v8 }
  0x4c   :  { %2445 = vmatpush1.bf16.msra.mxu0 %v3024_v42  ;;  %2574 = vmatpush1.bf16.msra.mxu1 %v3026_v43  ;;  %v3067_v14 = vcombine.high %v133_v9, %v137_v10  ;;  %v144_v16 = vld [vmem:[#allocation5 + $0x2a0] sm:$0xff]  ;;  %v141_v17 = vld [vmem:[#allocation5 + $0x288] sm:$0xff]  ;;  %v3066_v20 = vcombine.low %v133_v9, %v137_v10 }
  0x4d   :  { %2446 = vmatprep.subr.bf16.mxu0 %v3033_v44  ;;  %2575 = vmatprep.subr.bf16.mxu1 %v3035_v45  ;;  %v145_v18 = vld [vmem:[#allocation5 + $0x2a8] sm:$0xff]  ;;  %v3073_v21 = vcombine.high %v140_v15, %v144_v16  ;;  %v148_v23 = vld [vmem:[#allocation5 + $0x2c0] sm:$0xff]  ;;  %v3072_v27 = vcombine.low %v140_v15, %v144_v16 }
  0x4e   :  { %v3075_v22 = vcombine.high %v141_v17, %v145_v18  ;;  %v152_v24 = vld [vmem:[#allocation5 + $0x2e0] sm:$0xff]  ;;  %v149_v25 = vld [vmem:[#allocation5 + $0x2c8] sm:$0xff]  ;;  %v3074_v28 = vcombine.low %v141_v17, %v145_v18  ;;  %v3437_v18 = vld [vmem:[#allocation2 + $0xc] ss:$24 sps:$4 sm:$0xff]  }
  0x4f   :  { %v153_v26 = vld [vmem:[#allocation5 + $0x2e8] sm:$0xff]  ;;  %v3081_v29 = vcombine.high %v148_v23, %v152_v24  ;;  %v156_v31 = vld [vmem:[#allocation5 + $0x300] sm:$0xff]  ;;  %v3080_v35 = vcombine.low %v148_v23, %v152_v24 }
  0x50   :  { %2447 = vmatpush1.bf16.msra.mxu0 %v3032_v50  ;;  %2576 = vmatpush1.bf16.msra.mxu1 %v3034_v51  ;;  %v3083_v30 = vcombine.high %v149_v25, %v153_v26  ;;  %v160_v32 = vld [vmem:[#allocation5 + $0x320] sm:$0xff]  ;;  %v157_v33 = vld [vmem:[#allocation5 + $0x308] sm:$0xff]  ;;  %v3082_v36 = vcombine.low %v149_v25, %v153_v26 }
  0x51   :  { %2448 = vmatprep.subr.bf16.mxu0 %v3041_v52  ;;  %2577 = vmatprep.subr.bf16.mxu1 %v3043_v53  ;;  %v161_v34 = vld [vmem:[#allocation5 + $0x328] sm:$0xff]  ;;  %v3089_v37 = vcombine.high %v156_v31, %v160_v32  ;;  %v164_v39 = vld [vmem:[#allocation5 + $0x340] sm:$0xff]  ;;  %v3088_v43 = vcombine.low %v156_v31, %v160_v32 }
  0x52   :  { %v3091_v38 = vcombine.high %v157_v33, %v161_v34  ;;  %v168_v40 = vld [vmem:[#allocation5 + $0x360] sm:$0xff]  ;;  %v165_v41 = vld [vmem:[#allocation5 + $0x348] sm:$0xff]  ;;  %v3090_v44 = vcombine.low %v157_v33, %v161_v34 }
  0x53   :  { %v169_v42 = vld [vmem:[#allocation5 + $0x368] sm:$0xff]  ;;  %v3097_v45 = vcombine.high %v164_v39, %v168_v40  ;;  %v172_v47 = vld [vmem:[#allocation5 + $0x380] sm:$0xff]  ;;  %v3096_v51 = vcombine.low %v164_v39, %v168_v40 }
  0x54   :  { %2449 = vmatpush1.bf16.msra.mxu0 %v3040_v59  ;;  %2578 = vmatpush1.bf16.msra.mxu1 %v3042_v60  ;;  %v3099_v46 = vcombine.high %v165_v41, %v169_v42  ;;  %v176_v48 = vld [vmem:[#allocation5 + $0x3a0] sm:$0xff]  ;;  %v173_v49 = vld [vmem:[#allocation5 + $0x388] sm:$0xff]  ;;  %v3098_v52 = vcombine.low %v165_v41, %v169_v42 }
  0x55   :  { %2450 = vmatprep.subr.bf16.mxu0 %v3049_v61  ;;  %2579 = vmatprep.subr.bf16.mxu1 %v3051_v62  ;;  %v177_v50 = vld [vmem:[#allocation5 + $0x3a8] sm:$0xff]  ;;  %v3105_v53 = vcombine.high %v172_v47, %v176_v48  ;;  %v180_v55 = vld [vmem:[#allocation5 + $0x3c0] sm:$0xff]  ;;  %v3104_v59 = vcombine.low %v172_v47, %v176_v48 }
  0x56   :  { %v3107_v54 = vcombine.high %v173_v49, %v177_v50  ;;  %v184_v56 = vld [vmem:[#allocation5 + $0x3e0] sm:$0xff]  ;;  %v181_v57 = vld [vmem:[#allocation5 + $0x3c8] sm:$0xff]  ;;  %v3106_v60 = vcombine.low %v173_v49, %v177_v50 }
  0x57   :  { %v185_v58 = vld [vmem:[#allocation5 + $0x3e8] sm:$0xff]  ;;  %v3113_v61 = vcombine.high %v180_v55, %v184_v56  ;;  %v188_v63 = vld [vmem:[#allocation5 + $0x400] sm:$0xff] }
  0x58   :  { %2451 = vmatpush1.bf16.msra.mxu0 %v3048_v3  ;;  %2580 = vmatpush1.bf16.msra.mxu1 %v3050_v4  ;;  %v3115_v62 = vcombine.high %v181_v57, %v185_v58  ;;  %v192_v0 = vld [vmem:[#allocation5 + $0x420] sm:$0xff]  ;;  %v189_v1 = vld [vmem:[#allocation5 + $0x408] sm:$0xff]  ;;  %v3112_v3 = vcombine.low %v180_v55, %v184_v56  ;;  %v3114_v4 = vcombine.low %v181_v57, %v185_v58 }
  0x59   :  { %2452 = vmatprep.subr.bf16.mxu0 %v3057_v5  ;;  %2581 = vmatprep.subr.bf16.mxu1 %v3059_v6  ;;  %v193_v2 = vld [vmem:[#allocation5 + $0x428] sm:$0xff]  ;;  %v3121_v5 = vcombine.high %v188_v63, %v192_v0  ;;  %v196_v7 = vld [vmem:[#allocation5 + $0x440] sm:$0xff] }
  0x5a   :  { %v3123_v6 = vcombine.high %v189_v1, %v193_v2  ;;  %v200_v8 = vld [vmem:[#allocation5 + $0x460] sm:$0xff]  ;;  %v3436_v9 = vld [vmem:[#allocation2] ss:$24 sps:$4 sm:$0xff]  }
  0x5b   :  { %v197_v10 = vld [vmem:[#allocation5 + $0x448] sm:$0xff]  ;;  %v204_v15 = vld [vmem:[#allocation5 + $0x480] sm:$0xff] }
  0x5c   :  { %2453 = vmatpush1.bf16.msra.mxu0 %v3056_v11  ;;  %2582 = vmatpush1.bf16.msra.mxu1 %v3058_v12  ;;  %v201_v11 = vld [vmem:[#allocation5 + $0x468] sm:$0xff]  ;;  %v3120_v12 = vcombine.low %v188_v63, %v192_v0  ;;  %v208_v17 = vld [vmem:[#allocation5 + $0x4a0] sm:$0xff] }
  0x5d   :  { %2454 = vmatprep.subr.bf16.mxu0 %v3065_v13  ;;  %2583 = vmatprep.subr.bf16.mxu1 %v3067_v14  ;;  %v3122_v13 = vcombine.low %v189_v1, %v193_v2  ;;  %v3129_v14 = vcombine.high %v196_v7, %v200_v8  ;;  %v3131_v16 = vcombine.high %v197_v10, %v201_v11  ;;  %v212_v25 = vld [vmem:[#allocation5 + $0x4c0] sm:$0xff] }
  0x5e   :  { %v3137_v23 = vcombine.high %v204_v15, %v208_v17  ;;  %v216_v26 = vld [vmem:[#allocation5 + $0x4e0] sm:$0xff] }
  0x5f   :  { %v3145_v31 = vcombine.high %v212_v25, %v216_v26  ;;  %v220_v33 = vld [vmem:[#allocation5 + $0x500] sm:$0xff] }
  0x60   :  { %2455 = vmatpush1.bf16.msra.mxu0 %v3064_v19  ;;  %2584 = vmatpush1.bf16.msra.mxu1 %v3066_v20  ;;  %v205_v19 = vld [vmem:[#allocation5 + $0x488] sm:$0xff]  ;;  %v224_v34 = vld [vmem:[#allocation5 + $0x520] sm:$0xff] }
  0x61   :  { %2456 = vmatprep.subr.bf16.mxu0 %v3073_v21  ;;  %2585 = vmatprep.subr.bf16.mxu1 %v3075_v22  ;;  %v209_v20 = vld [vmem:[#allocation5 + $0x4a8] sm:$0xff]  ;;  %v3128_v21 = vcombine.low %v196_v7, %v200_v8  ;;  %v3130_v22 = vcombine.low %v197_v10, %v201_v11  ;;  %v3153_v39 = vcombine.high %v220_v33, %v224_v34  ;;  %v228_v41 = vld [vmem:[#allocation5 + $0x540] sm:$0xff] }
  0x62   :  { %v3139_v24 = vcombine.high %v205_v19, %v209_v20  ;;  %v232_v42 = vld [vmem:[#allocation5 + $0x560] sm:$0xff]  ;;  %v261_v11 = vld [vmem:[#allocation5 + $0x648] sm:$0xff] }
  0x63   :  { %v3161_v47 = vcombine.high %v228_v41, %v232_v42  ;;  %v236_v49 = vld [vmem:[#allocation5 + $0x580] sm:$0xff] }
  0x64   :  { %2457 = vmatpush1.bf16.msra.mxu0 %v3072_v27  ;;  %2586 = vmatpush1.bf16.msra.mxu1 %v3074_v28  ;;  %v213_v27 = vld [vmem:[#allocation5 + $0x4c8] sm:$0xff]  ;;  %v240_v50 = vld [vmem:[#allocation5 + $0x5a0] sm:$0xff] }
  0x65   :  { %2458 = vmatprep.subr.bf16.mxu0 %v3081_v29  ;;  %2587 = vmatprep.subr.bf16.mxu1 %v3083_v30  ;;  %v217_v28 = vld [vmem:[#allocation5 + $0x4e8] sm:$0xff]  ;;  %v3136_v29 = vcombine.low %v204_v15, %v208_v17  ;;  %v3138_v30 = vcombine.low %v205_v19, %v209_v20  ;;  %v3169_v55 = vcombine.high %v236_v49, %v240_v50  ;;  %v244_v57 = vld [vmem:[#allocation5 + $0x5c0] sm:$0xff] }
  0x66   :  { %v3147_v32 = vcombine.high %v213_v27, %v217_v28  ;;  %v248_v58 = vld [vmem:[#allocation5 + $0x5e0] sm:$0xff]  ;;  %v269_v19 = vld [vmem:[#allocation5 + $0x688] sm:$0xff] }
  0x67   :  { %v3177_v63 = vcombine.high %v244_v57, %v248_v58  ;;  %v252_v1 = vld [vmem:[#allocation5 + $0x600] sm:$0xff]  ;;  %v273_v20 = vld [vmem:[#allocation5 + $0x6a8] sm:$0xff] }
  0x68   :  { %2459 = vmatpush1.bf16.msra.mxu0 %v3080_v35  ;;  %2588 = vmatpush1.bf16.msra.mxu1 %v3082_v36  ;;  %v221_v35 = vld [vmem:[#allocation5 + $0x508] sm:$0xff]  ;;  %v256_v2 = vld [vmem:[#allocation5 + $0x620] sm:$0xff] }
  0x69   :  { %2460 = vmatprep.subr.bf16.mxu0 %v3089_v37  ;;  %2589 = vmatprep.subr.bf16.mxu1 %v3091_v38  ;;  %v225_v36 = vld [vmem:[#allocation5 + $0x528] sm:$0xff]  ;;  %v3144_v37 = vcombine.low %v212_v25, %v216_v26  ;;  %v3146_v38 = vcombine.low %v213_v27, %v217_v28  ;;  %v3185_v7 = vcombine.high %v252_v1, %v256_v2  ;;  %v264_v10 = vld [vmem:[#allocation5 + $0x660] sm:$0xff] }
  0x6a   :  { %v3155_v40 = vcombine.high %v221_v35, %v225_v36  ;;  %v268_v17 = vld [vmem:[#allocation5 + $0x680] sm:$0xff]  ;;  %v277_v27 = vld [vmem:[#allocation5 + $0x6c8] sm:$0xff] }
  0x6b   :  { %v276_v25 = vld [vmem:[#allocation5 + $0x6c0] sm:$0xff]  ;;  %v281_v28 = vld [vmem:[#allocation5 + $0x6e8] sm:$0xff] }
  0x6c   :  { %2461 = vmatpush1.bf16.msra.mxu0 %v3088_v43  ;;  %2590 = vmatpush1.bf16.msra.mxu1 %v3090_v44  ;;  %v229_v43 = vld [vmem:[#allocation5 + $0x548] sm:$0xff]  ;;  %v280_v26 = vld [vmem:[#allocation5 + $0x6e0] sm:$0xff] }
  0x6d   :  { %2462 = vmatprep.subr.bf16.mxu0 %v3097_v45  ;;  %2591 = vmatprep.subr.bf16.mxu1 %v3099_v46  ;;  %v233_v44 = vld [vmem:[#allocation5 + $0x568] sm:$0xff]  ;;  %v3152_v45 = vcombine.low %v220_v33, %v224_v34  ;;  %v3154_v46 = vcombine.low %v221_v35, %v225_v36  ;;  %v284_v33 = vld [vmem:[#allocation5 + $0x700] sm:$0xff] }
  0x6e   :  { %v3163_v48 = vcombine.high %v229_v43, %v233_v44  ;;  %v288_v34 = vld [vmem:[#allocation5 + $0x720] sm:$0xff]  ;;  %v285_v35 = vld [vmem:[#allocation5 + $0x708] sm:$0xff] }
  0x6f   :  { %v289_v36 = vld [vmem:[#allocation5 + $0x728] sm:$0xff] }
  0x70   :  { %2463 = vmatpush1.bf16.msra.mxu0 %v3096_v51  ;;  %2592 = vmatpush1.bf16.msra.mxu1 %v3098_v52  ;;  %v237_v51 = vld [vmem:[#allocation5 + $0x588] sm:$0xff] }
  0x71   :  { %2464 = vmatprep.subr.bf16.mxu0 %v3105_v53  ;;  %2593 = vmatprep.subr.bf16.mxu1 %v3107_v54  ;;  %v241_v52 = vld [vmem:[#allocation5 + $0x5a8] sm:$0xff]  ;;  %v3160_v53 = vcombine.low %v228_v41, %v232_v42  ;;  %v3162_v54 = vcombine.low %v229_v43, %v233_v44  ;;  %v292_v41 = vld [vmem:[#allocation5 + $0x740] sm:$0xff] }
  0x72   :  { %v3171_v56 = vcombine.high %v237_v51, %v241_v52  ;;  %v296_v42 = vld [vmem:[#allocation5 + $0x760] sm:$0xff]  ;;  %v293_v43 = vld [vmem:[#allocation5 + $0x748] sm:$0xff] }
  0x73   :  { %v297_v44 = vld [vmem:[#allocation5 + $0x768] sm:$0xff] }
  0x74   :  { %2465 = vmatpush1.bf16.msra.mxu0 %v3104_v59  ;;  %2594 = vmatpush1.bf16.msra.mxu1 %v3106_v60  ;;  %v245_v59 = vld [vmem:[#allocation5 + $0x5c8] sm:$0xff] }
  0x75   :  { %2466 = vmatprep.subr.bf16.mxu0 %v3113_v61  ;;  %2595 = vmatprep.subr.bf16.mxu1 %v3115_v62  ;;  %v249_v60 = vld [vmem:[#allocation5 + $0x5e8] sm:$0xff]  ;;  %v3168_v61 = vcombine.low %v236_v49, %v240_v50  ;;  %v3170_v62 = vcombine.low %v237_v51, %v241_v52  ;;  %v300_v49 = vld [vmem:[#allocation5 + $0x780] sm:$0xff] }
  0x76   :  { %v3179_v0 = vcombine.high %v245_v59, %v249_v60  ;;  %v304_v50 = vld [vmem:[#allocation5 + $0x7a0] sm:$0xff]  ;;  %v301_v51 = vld [vmem:[#allocation5 + $0x788] sm:$0xff] }
  0x77   :  { %v305_v52 = vld [vmem:[#allocation5 + $0x7a8] sm:$0xff] }
  0x78   :  { %2467 = vmatpush1.bf16.msra.mxu0 %v3112_v3  ;;  %2596 = vmatpush1.bf16.msra.mxu1 %v3114_v4  ;;  %v253_v3 = vld [vmem:[#allocation5 + $0x608] sm:$0xff] }
  0x79   :  { %2479 = vmatprep.subr.bf16.mxu0 %v3121_v5  ;;  %2608 = vmatprep.subr.bf16.mxu1 %v3123_v6  ;;  %v257_v4 = vld [vmem:[#allocation5 + $0x628] sm:$0xff]  ;;  %v3176_v5 = vcombine.low %v244_v57, %v248_v58  ;;  %v3178_v6 = vcombine.low %v245_v59, %v249_v60  ;;  %v308_v57 = vld [vmem:[#allocation5 + $0x7c0] sm:$0xff] }
  0x7a   :  { %v3187_v8 = vcombine.high %v253_v3, %v257_v4  ;;  %v312_v58 = vld [vmem:[#allocation5 + $0x7e0] sm:$0xff]  ;;  %v309_v59 = vld [vmem:[#allocation5 + $0x7c8] sm:$0xff] }
  0x7b   :  { %2469 = vmatmul.mubr.bf16.vlgmr.msra.gmra.mrb[0].mxu0 %v3436_v9  ;;  %2598 = vmatmul.mubr.bf16.vlgmr.msra.gmra.mrb[0].mxu1 %v3436_v9  ;;  %v260_v9 = vld [vmem:[#allocation5 + $0x640] sm:$0xff]  ;;  %v313_v60 = vld [vmem:[#allocation5 + $0x7e8] sm:$0xff] }
  0x7c   :  { %2480 = vmatpush1.bf16.msra.mxu0 %v3120_v12  ;;  %2609 = vmatpush1.bf16.msra.mxu1 %v3122_v13  ;;  %v265_v12 = vld [vmem:[#allocation5 + $0x668] sm:$0xff]  ;;  %v3184_v13 = vcombine.low %v252_v1, %v256_v2  ;;  %v3193_v15 = vcombine.high %v260_v9, %v264_v10  ;;  %v316_v1 = vld [vmem:[#allocation5 + $0x800] sm:$0xff] }
  0x7d   :  { %2481 = vmatprep.subr.bf16.mxu0 %v3129_v14  ;;  %2610 = vmatprep.subr.bf16.mxu1 %v3131_v16  ;;  %v3186_v14 = vcombine.low %v253_v3, %v257_v4  ;;  %v3195_v16 = vcombine.high %v261_v11, %v265_v12  ;;  %v320_v2 = vld [vmem:[#allocation5 + $0x820] sm:$0xff]  ;;  %v317_v3 = vld [vmem:[#allocation5 + $0x808] sm:$0xff] }
  0x7e   :  { %2511 = vmatprep.mubr.bf16.mxu0 %v3437_v18  ;;  %2640 = vmatprep.mubr.bf16.mxu1 %v3437_v18  ;;  %v272_v18 = vld [vmem:[#allocation5 + $0x6a0] sm:$0xff]  ;;  %v321_v4 = vld [vmem:[#allocation5 + $0x828] sm:$0xff] }
  0x80   :  { %2482 = vmatpush1.bf16.msra.mxu0 %v3128_v21  ;;  %2611 = vmatpush1.bf16.msra.mxu1 %v3130_v22  ;;  %v3192_v21 = vcombine.low %v260_v9, %v264_v10  ;;  %v3194_v22 = vcombine.low %v261_v11, %v265_v12  ;;  %v324_v9 = vld [vmem:[#allocation5 + $0x840] sm:$0xff]  ;;  %v3439_v11 = vld [vmem:[#allocation2 + $0x8] ss:$24 sps:$4 sm:$0xff]   ;;  %v325_v12 = vld [vmem:[#allocation5 + $0x848] sm:$0xff] }
  0x81   :  { %2483 = vmatprep.subr.bf16.mxu0 %v3137_v23  ;;  %2612 = vmatprep.subr.bf16.mxu1 %v3139_v24  ;;  %v3201_v23 = vcombine.high %v268_v17, %v272_v18  ;;  %v3203_v24 = vcombine.high %v269_v19, %v273_v20  ;;  %v328_v10 = vld [vmem:[#allocation5 + $0x860] sm:$0xff] }
  0x84   :  { %2484 = vmatpush1.bf16.msra.mxu0 %v3136_v29  ;;  %2613 = vmatpush1.bf16.msra.mxu1 %v3138_v30  ;;  %v3200_v29 = vcombine.low %v268_v17, %v272_v18  ;;  %v3202_v30 = vcombine.low %v269_v19, %v273_v20  ;;  %v332_v18 = vld [vmem:[#allocation5 + $0x880] sm:$0xff] }
  0x85   :  { %2485 = vmatprep.subr.bf16.mxu0 %v3145_v31  ;;  %2614 = vmatprep.subr.bf16.mxu1 %v3147_v32  ;;  %v3209_v31 = vcombine.high %v276_v25, %v280_v26  ;;  %v3211_v32 = vcombine.high %v277_v27, %v281_v28  ;;  %v336_v19 = vld [vmem:[#allocation5 + $0x8a0] sm:$0xff] }
  0x86   :  { %v3440_v20 = vld [vmem:[#allocation2 + $0x14] ss:$24 sps:$4 sm:$0xff]  }
  0x88   :  { %2486 = vmatpush1.bf16.msra.mxu0 %v3144_v37  ;;  %2615 = vmatpush1.bf16.msra.mxu1 %v3146_v38  ;;  %v3208_v37 = vcombine.low %v276_v25, %v280_v26  ;;  %v3210_v38 = vcombine.low %v277_v27, %v281_v28  ;;  %v3265_v25 = vcombine.high %v332_v18, %v336_v19  ;;  %v340_v27 = vld [vmem:[#allocation5 + $0x8c0] sm:$0xff] }
  0x89   :  { %2487 = vmatprep.subr.bf16.mxu0 %v3153_v39  ;;  %2616 = vmatprep.subr.bf16.mxu1 %v3155_v40  ;;  %v3217_v39 = vcombine.high %v284_v33, %v288_v34  ;;  %v3219_v40 = vcombine.high %v285_v35, %v289_v36  ;;  %v344_v28 = vld [vmem:[#allocation5 + $0x8e0] sm:$0xff] }
  0x8c   :  { %2488 = vmatpush1.bf16.msra.mxu0 %v3152_v45  ;;  %2617 = vmatpush1.bf16.msra.mxu1 %v3154_v46  ;;  %v3216_v45 = vcombine.low %v284_v33, %v288_v34  ;;  %v3218_v46 = vcombine.low %v285_v35, %v289_v36  ;;  %v3273_v33 = vcombine.high %v340_v27, %v344_v28  ;;  %v348_v35 = vld [vmem:[#allocation5 + $0x900] sm:$0xff] }
  0x8d   :  { %2489 = vmatprep.subr.bf16.mxu0 %v3161_v47  ;;  %2618 = vmatprep.subr.bf16.mxu1 %v3163_v48  ;;  %v3225_v47 = vcombine.high %v292_v41, %v296_v42  ;;  %v3227_v48 = vcombine.high %v293_v43, %v297_v44  ;;  %v352_v36 = vld [vmem:[#allocation5 + $0x920] sm:$0xff] }
  0x90   :  { %2490 = vmatpush1.bf16.msra.mxu0 %v3160_v53  ;;  %2619 = vmatpush1.bf16.msra.mxu1 %v3162_v54  ;;  %v3224_v53 = vcombine.low %v292_v41, %v296_v42  ;;  %v3226_v54 = vcombine.low %v293_v43, %v297_v44  ;;  %v3281_v41 = vcombine.high %v348_v35, %v352_v36  ;;  %v356_v43 = vld [vmem:[#allocation5 + $0x940] sm:$0xff] }
  0x91   :  { %2491 = vmatprep.subr.bf16.mxu0 %v3169_v55  ;;  %2620 = vmatprep.subr.bf16.mxu1 %v3171_v56  ;;  %v3233_v55 = vcombine.high %v300_v49, %v304_v50  ;;  %v3235_v56 = vcombine.high %v301_v51, %v305_v52  ;;  %v360_v44 = vld [vmem:[#allocation5 + $0x960] sm:$0xff] }
  0x94   :  { %2492 = vmatpush1.bf16.msra.mxu0 %v3168_v61  ;;  %2621 = vmatpush1.bf16.msra.mxu1 %v3170_v62  ;;  %v3232_v61 = vcombine.low %v300_v49, %v304_v50  ;;  %v3234_v62 = vcombine.low %v301_v51, %v305_v52  ;;  %v3289_v49 = vcombine.high %v356_v43, %v360_v44  ;;  %v364_v51 = vld [vmem:[#allocation5 + $0x980] sm:$0xff] }
  0x95   :  { %2493 = vmatprep.subr.bf16.mxu0 %v3177_v63  ;;  %2622 = vmatprep.subr.bf16.mxu1 %v3179_v0  ;;  %v3241_v63 = vcombine.high %v308_v57, %v312_v58  ;;  %v3243_v0 = vcombine.high %v309_v59, %v313_v60  ;;  %v368_v52 = vld [vmem:[#allocation5 + $0x9a0] sm:$0xff] }
  0x98   :  { %2494 = vmatpush1.bf16.msra.mxu0 %v3176_v5  ;;  %2623 = vmatpush1.bf16.msra.mxu1 %v3178_v6  ;;  %v3240_v5 = vcombine.low %v308_v57, %v312_v58  ;;  %v3242_v6 = vcombine.low %v309_v59, %v313_v60  ;;  %v3297_v57 = vcombine.high %v364_v51, %v368_v52  ;;  %v372_v59 = vld [vmem:[#allocation5 + $0x9c0] sm:$0xff] }
  0x99   :  { %2495 = vmatprep.subr.bf16.mxu0 %v3185_v7  ;;  %2624 = vmatprep.subr.bf16.mxu1 %v3187_v8  ;;  %v3249_v7 = vcombine.high %v316_v1, %v320_v2  ;;  %v3251_v8 = vcombine.high %v317_v3, %v321_v4  ;;  %v376_v60 = vld [vmem:[#allocation5 + $0x9e0] sm:$0xff] }
  0x9c   :  { %2496 = vmatpush1.bf16.msra.mxu0 %v3184_v13  ;;  %2625 = vmatpush1.bf16.msra.mxu1 %v3186_v14  ;;  %v329_v13 = vld [vmem:[#allocation5 + $0x868] sm:$0xff]  ;;  %v3248_v14 = vcombine.low %v316_v1, %v320_v2  ;;  %v3305_v1 = vcombine.high %v372_v59, %v376_v60 }
  0x9d   :  { %2497 = vmatprep.subr.bf16.mxu0 %v3193_v15  ;;  %2626 = vmatprep.subr.bf16.mxu1 %v3195_v16  ;;  %v3250_v15 = vcombine.low %v317_v3, %v321_v4  ;;  %v3257_v16 = vcombine.high %v324_v9, %v328_v10  ;;  %v3259_v17 = vcombine.high %v325_v12, %v329_v13  ;;  %v380_v3 = vld [vmem:[#allocation5 + $0xa00] sm:$0xff] }
  0x9e   :  { %v384_v4 = vld [vmem:[#allocation5 + $0xa20] sm:$0xff] }
  0xa0   :  { %2498 = vmatpush1.bf16.msra.mxu0 %v3192_v21  ;;  %2627 = vmatpush1.bf16.msra.mxu1 %v3194_v22  ;;  %v333_v21 = vld [vmem:[#allocation5 + $0x888] sm:$0xff] }
  0xa1   :  { %2499 = vmatprep.subr.bf16.mxu0 %v3201_v23  ;;  %2628 = vmatprep.subr.bf16.mxu1 %v3203_v24  ;;  %v337_v22 = vld [vmem:[#allocation5 + $0x8a8] sm:$0xff]  ;;  %v3256_v23 = vcombine.low %v324_v9, %v328_v10  ;;  %v3258_v24 = vcombine.low %v325_v12, %v329_v13  ;;  %v3313_v9 = vcombine.high %v380_v3, %v384_v4  ;;  %v392_v12 = vld [vmem:[#allocation5 + $0xa60] sm:$0xff] }
  0xa2   :  { %v3267_v26 = vcombine.high %v333_v21, %v337_v22  ;;  %v389_v13 = vld [vmem:[#allocation5 + $0xa48] sm:$0xff] }
  0xa4   :  { %2500 = vmatpush1.bf16.msra.mxu0 %v3200_v29  ;;  %2629 = vmatpush1.bf16.msra.mxu1 %v3202_v30  ;;  %v341_v29 = vld [vmem:[#allocation5 + $0x8c8] sm:$0xff] }
  0xa5   :  { %2501 = vmatprep.subr.bf16.mxu0 %v3209_v31  ;;  %2630 = vmatprep.subr.bf16.mxu1 %v3211_v32  ;;  %v345_v30 = vld [vmem:[#allocation5 + $0x8e8] sm:$0xff]  ;;  %v3264_v31 = vcombine.low %v332_v18, %v336_v19  ;;  %v3266_v32 = vcombine.low %v333_v21, %v337_v22  ;;  %v396_v19 = vld [vmem:[#allocation5 + $0xa80] sm:$0xff] }
  0xa6   :  { %v3275_v34 = vcombine.high %v341_v29, %v345_v30  ;;  %v397_v21 = vld [vmem:[#allocation5 + $0xa88] sm:$0xff] }
  0xa7   :  { %v401_v22 = vld [vmem:[#allocation5 + $0xaa8] sm:$0xff] }
  0xa8   :  { %2502 = vmatpush1.bf16.msra.mxu0 %v3208_v37  ;;  %2631 = vmatpush1.bf16.msra.mxu1 %v3210_v38  ;;  %v349_v37 = vld [vmem:[#allocation5 + $0x908] sm:$0xff] }
  0xa9   :  { %2503 = vmatprep.subr.bf16.mxu0 %v3217_v39  ;;  %2632 = vmatprep.subr.bf16.mxu1 %v3219_v40  ;;  %v353_v38 = vld [vmem:[#allocation5 + $0x928] sm:$0xff]  ;;  %v3272_v39 = vcombine.low %v340_v27, %v344_v28  ;;  %v3274_v40 = vcombine.low %v341_v29, %v345_v30  ;;  %v404_v27 = vld [vmem:[#allocation5 + $0xac0] sm:$0xff] }
  0xaa   :  { %v3283_v42 = vcombine.high %v349_v37, %v353_v38  ;;  %v408_v28 = vld [vmem:[#allocation5 + $0xae0] sm:$0xff]  ;;  %v405_v29 = vld [vmem:[#allocation5 + $0xac8] sm:$0xff] }
  0xab   :  { %v409_v30 = vld [vmem:[#allocation5 + $0xae8] sm:$0xff] }
  0xac   :  { %2504 = vmatpush1.bf16.msra.mxu0 %v3216_v45  ;;  %2633 = vmatpush1.bf16.msra.mxu1 %v3218_v46  ;;  %v357_v45 = vld [vmem:[#allocation5 + $0x948] sm:$0xff] }
  0xad   :  { %2505 = vmatprep.subr.bf16.mxu0 %v3225_v47  ;;  %2634 = vmatprep.subr.bf16.mxu1 %v3227_v48  ;;  %v361_v46 = vld [vmem:[#allocation5 + $0x968] sm:$0xff]  ;;  %v3280_v47 = vcombine.low %v348_v35, %v352_v36  ;;  %v3282_v48 = vcombine.low %v349_v37, %v353_v38  ;;  %v412_v35 = vld [vmem:[#allocation5 + $0xb00] sm:$0xff] }
  0xae   :  { %v3291_v50 = vcombine.high %v357_v45, %v361_v46  ;;  %v416_v36 = vld [vmem:[#allocation5 + $0xb20] sm:$0xff]  ;;  %v413_v37 = vld [vmem:[#allocation5 + $0xb08] sm:$0xff] }
  0xaf   :  { %v417_v38 = vld [vmem:[#allocation5 + $0xb28] sm:$0xff] }
  0xb0   :  { %2506 = vmatpush1.bf16.msra.mxu0 %v3224_v53  ;;  %2635 = vmatpush1.bf16.msra.mxu1 %v3226_v54  ;;  %v365_v53 = vld [vmem:[#allocation5 + $0x988] sm:$0xff] }
  0xb1   :  { %2507 = vmatprep.subr.bf16.mxu0 %v3233_v55  ;;  %2636 = vmatprep.subr.bf16.mxu1 %v3235_v56  ;;  %v369_v54 = vld [vmem:[#allocation5 + $0x9a8] sm:$0xff]  ;;  %v3288_v55 = vcombine.low %v356_v43, %v360_v44  ;;  %v3290_v56 = vcombine.low %v357_v45, %v361_v46  ;;  %v420_v43 = vld [vmem:[#allocation5 + $0xb40] sm:$0xff] }
  0xb2   :  { %v3299_v58 = vcombine.high %v365_v53, %v369_v54  ;;  %v424_v44 = vld [vmem:[#allocation5 + $0xb60] sm:$0xff]  ;;  %v421_v45 = vld [vmem:[#allocation5 + $0xb48] sm:$0xff] }
  0xb3   :  { %v425_v46 = vld [vmem:[#allocation5 + $0xb68] sm:$0xff] }
  0xb4   :  { %2508 = vmatpush1.bf16.msra.mxu0 %v3232_v61  ;;  %2637 = vmatpush1.bf16.msra.mxu1 %v3234_v62  ;;  %v373_v61 = vld [vmem:[#allocation5 + $0x9c8] sm:$0xff] }
  0xb5   :  { %2509 = vmatprep.subr.bf16.mxu0 %v3241_v63  ;;  %2638 = vmatprep.subr.bf16.mxu1 %v3243_v0  ;;  %v377_v62 = vld [vmem:[#allocation5 + $0x9e8] sm:$0xff]  ;;  %v3296_v63 = vcombine.low %v364_v51, %v368_v52  ;;  %v3298_v0 = vcombine.low %v365_v53, %v369_v54  ;;  %v428_v51 = vld [vmem:[#allocation5 + $0xb80] sm:$0xff] }
  0xb6   :  { %v3307_v2 = vcombine.high %v373_v61, %v377_v62  ;;  %v432_v52 = vld [vmem:[#allocation5 + $0xba0] sm:$0xff]  ;;  %v429_v53 = vld [vmem:[#allocation5 + $0xb88] sm:$0xff] }
  0xb7   :  { %v433_v54 = vld [vmem:[#allocation5 + $0xba8] sm:$0xff] }
  0xb8   :  { %2510 = vmatpush1.bf16.msra.mxu0 %v3240_v5  ;;  %2639 = vmatpush1.bf16.msra.mxu1 %v3242_v6  ;;  %v381_v5 = vld [vmem:[#allocation5 + $0xa08] sm:$0xff] }
  0xb9   :  { %2522 = vmatprep.subr.bf16.mxu0 %v3249_v7  ;;  %2651 = vmatprep.subr.bf16.mxu1 %v3251_v8  ;;  %v385_v6 = vld [vmem:[#allocation5 + $0xa28] sm:$0xff]  ;;  %v3304_v7 = vcombine.low %v372_v59, %v376_v60  ;;  %v3306_v8 = vcombine.low %v373_v61, %v377_v62  ;;  %v436_v59 = vld [vmem:[#allocation5 + $0xbc0] sm:$0xff] }
  0xba   :  { %v3315_v10 = vcombine.high %v381_v5, %v385_v6  ;;  %v440_v60 = vld [vmem:[#allocation5 + $0xbe0] sm:$0xff]  ;;  %v437_v61 = vld [vmem:[#allocation5 + $0xbc8] sm:$0xff] }
  0xbb   :  { %2512 = vmatmul.mubr.bf16.vlgmr.msra.gmra.mrb[0].mxu0 %v3439_v11  ;;  %2641 = vmatmul.mubr.bf16.vlgmr.msra.gmra.mrb[0].mxu1 %v3439_v11  ;;  %v388_v11 = vld [vmem:[#allocation5 + $0xa40] sm:$0xff]  ;;  %v441_v62 = vld [vmem:[#allocation5 + $0xbe8] sm:$0xff] }
  0xbc   :  { %2523 = vmatpush1.bf16.msra.mxu0 %v3248_v14  ;;  %2652 = vmatpush1.bf16.msra.mxu1 %v3250_v15  ;;  %v393_v14 = vld [vmem:[#allocation5 + $0xa68] sm:$0xff]  ;;  %v3312_v15 = vcombine.low %v380_v3, %v384_v4  ;;  %v62_v3 = vld [vmem:[#allocation5 + $0x10] sm:$0xff] }
  0xbd   :  { %2524 = vmatprep.subr.bf16.mxu0 %v3257_v16  ;;  %2653 = vmatprep.subr.bf16.mxu1 %v3259_v17  ;;  %v3314_v16 = vcombine.low %v381_v5, %v385_v6  ;;  %v3321_v17 = vcombine.high %v388_v11, %v392_v12  ;;  %v3323_v18 = vcombine.high %v389_v13, %v393_v14  ;;  %v66_v4 = vld [vmem:[#allocation5 + $0x30] sm:$0xff]  ;;  %v63_v5 = vld [vmem:[#allocation5 + $0x18] sm:$0xff] }
  0xbe   :  { %2554 = vmatprep.mubr.bf16.mxu0 %v3440_v20  ;;  %2683 = vmatprep.mubr.bf16.mxu1 %v3440_v20  ;;  %v400_v20 = vld [vmem:[#allocation5 + $0xaa0] sm:$0xff]  ;;  %v67_v6 = vld [vmem:[#allocation5 + $0x38] sm:$0xff] }
  0xc0   :  { %2525 = vmatpush1.bf16.msra.mxu0 %v3256_v23  ;;  %2654 = vmatpush1.bf16.msra.mxu1 %v3258_v24  ;;  %v3320_v23 = vcombine.low %v388_v11, %v392_v12  ;;  %v3322_v24 = vcombine.low %v389_v13, %v393_v14  ;;  %v70_v11 = vld [vmem:[#allocation5 + $0x50] sm:$0xff]  ;;  %v3442_v13 = vld [vmem:[#allocation2 + $0x10] ss:$24 sps:$4 sm:$0xff]  }
  0xc1   :  { %2526 = vmatprep.subr.bf16.mxu0 %v3265_v25  ;;  %2655 = vmatprep.subr.bf16.mxu1 %v3267_v26  ;;  %v3329_v25 = vcombine.high %v396_v19, %v400_v20  ;;  %v3331_v26 = vcombine.high %v397_v21, %v401_v22  ;;  %v74_v12 = vld [vmem:[#allocation5 + $0x70] sm:$0xff]  ;;  %v71_v14 = vld [vmem:[#allocation5 + $0x58] sm:$0xff] }
  0xc4   :  { %2527 = vmatpush1.bf16.msra.mxu0 %v3264_v31  ;;  %2656 = vmatpush1.bf16.msra.mxu1 %v3266_v32  ;;  %v3328_v31 = vcombine.low %v396_v19, %v400_v20  ;;  %v3330_v32 = vcombine.low %v397_v21, %v401_v22  ;;  %v78_v20 = vld [vmem:[#allocation5 + $0x90] sm:$0xff]  ;;  %v79_v22 = vld [vmem:[#allocation5 + $0x98] sm:$0xff] }
  0xc5   :  { %2528 = vmatprep.subr.bf16.mxu0 %v3273_v33  ;;  %2657 = vmatprep.subr.bf16.mxu1 %v3275_v34  ;;  %v3337_v33 = vcombine.high %v404_v27, %v408_v28  ;;  %v3339_v34 = vcombine.high %v405_v29, %v409_v30  ;;  %v82_v21 = vld [vmem:[#allocation5 + $0xb0] sm:$0xff] }
  0xc8   :  { %2529 = vmatpush1.bf16.msra.mxu0 %v3272_v39  ;;  %2658 = vmatpush1.bf16.msra.mxu1 %v3274_v40  ;;  %v3336_v39 = vcombine.low %v404_v27, %v408_v28  ;;  %v3338_v40 = vcombine.low %v405_v29, %v409_v30  ;;  %v86_v28 = vld [vmem:[#allocation5 + $0xd0] sm:$0xff] }
  0xc9   :  { %2530 = vmatprep.subr.bf16.mxu0 %v3281_v41  ;;  %2659 = vmatprep.subr.bf16.mxu1 %v3283_v42  ;;  %v3345_v41 = vcombine.high %v412_v35, %v416_v36  ;;  %v3347_v42 = vcombine.high %v413_v37, %v417_v38  ;;  %v90_v29 = vld [vmem:[#allocation5 + $0xf0] sm:$0xff] }
  0xca   :  { %v3443_v30 = vld [vmem:[#allocation2 + $0x4] ss:$24 sps:$4 sm:$0xff]  }
  0xcc   :  { %2531 = vmatpush1.bf16.msra.mxu0 %v3280_v47  ;;  %2660 = vmatpush1.bf16.msra.mxu1 %v3282_v48  ;;  %v3344_v47 = vcombine.low %v412_v35, %v416_v36  ;;  %v3346_v48 = vcombine.low %v413_v37, %v417_v38  ;;  %v3021_v35 = vcombine.high %v86_v28, %v90_v29  ;;  %v94_v37 = vld [vmem:[#allocation5 + $0x110] sm:$0xff] }
  0xcd   :  { %2532 = vmatprep.subr.bf16.mxu0 %v3289_v49  ;;  %2661 = vmatprep.subr.bf16.mxu1 %v3291_v50  ;;  %v3353_v49 = vcombine.high %v420_v43, %v424_v44  ;;  %v3355_v50 = vcombine.high %v421_v45, %v425_v46  ;;  %v98_v38 = vld [vmem:[#allocation5 + $0x130] sm:$0xff] }
  0xd0   :  { %2533 = vmatpush1.bf16.msra.mxu0 %v3288_v55  ;;  %2662 = vmatpush1.bf16.msra.mxu1 %v3290_v56  ;;  %v3352_v55 = vcombine.low %v420_v43, %v424_v44  ;;  %v3354_v56 = vcombine.low %v421_v45, %v425_v46  ;;  %v3029_v43 = vcombine.high %v94_v37, %v98_v38  ;;  %v102_v45 = vld [vmem:[#allocation5 + $0x150] sm:$0xff] }
  0xd1   :  { %2534 = vmatprep.subr.bf16.mxu0 %v3297_v57  ;;  %2663 = vmatprep.subr.bf16.mxu1 %v3299_v58  ;;  %v3361_v57 = vcombine.high %v428_v51, %v432_v52  ;;  %v3363_v58 = vcombine.high %v429_v53, %v433_v54  ;;  %v106_v46 = vld [vmem:[#allocation5 + $0x170] sm:$0xff] }
  0xd4   :  { %2535 = vmatpush1.bf16.msra.mxu0 %v3296_v63  ;;  %2664 = vmatpush1.bf16.msra.mxu1 %v3298_v0  ;;  %v3360_v63 = vcombine.low %v428_v51, %v432_v52  ;;  %v3362_v0 = vcombine.low %v429_v53, %v433_v54  ;;  %v3037_v51 = vcombine.high %v102_v45, %v106_v46  ;;  %v110_v53 = vld [vmem:[#allocation5 + $0x190] sm:$0xff] }
  0xd5   :  { %2536 = vmatprep.subr.bf16.mxu0 %v3305_v1  ;;  %2665 = vmatprep.subr.bf16.mxu1 %v3307_v2  ;;  %v3369_v1 = vcombine.high %v436_v59, %v440_v60  ;;  %v3371_v2 = vcombine.high %v437_v61, %v441_v62  ;;  %v114_v54 = vld [vmem:[#allocation5 + $0x1b0] sm:$0xff] }
  0xd8   :  { %2537 = vmatpush1.bf16.msra.mxu0 %v3304_v7  ;;  %2666 = vmatpush1.bf16.msra.mxu1 %v3306_v8  ;;  %v3368_v7 = vcombine.low %v436_v59, %v440_v60  ;;  %v3370_v8 = vcombine.low %v437_v61, %v441_v62  ;;  %v3045_v59 = vcombine.high %v110_v53, %v114_v54  ;;  %v118_v61 = vld [vmem:[#allocation5 + $0x1d0] sm:$0xff] }
  0xd9   :  { %2538 = vmatprep.subr.bf16.mxu0 %v3313_v9  ;;  %2667 = vmatprep.subr.bf16.mxu1 %v3315_v10  ;;  %v2997_v9 = vcombine.high %v62_v3, %v66_v4  ;;  %v2999_v10 = vcombine.high %v63_v5, %v67_v6  ;;  %v122_v62 = vld [vmem:[#allocation5 + $0x1f0] sm:$0xff] }
  0xdc   :  { %2539 = vmatpush1.bf16.msra.mxu0 %v3312_v15  ;;  %2668 = vmatpush1.bf16.msra.mxu1 %v3314_v16  ;;  %v75_v15 = vld [vmem:[#allocation5 + $0x78] sm:$0xff]  ;;  %v2996_v16 = vcombine.low %v62_v3, %v66_v4  ;;  %v3053_v3 = vcombine.high %v118_v61, %v122_v62 }
  0xdd   :  { %2540 = vmatprep.subr.bf16.mxu0 %v3321_v17  ;;  %2669 = vmatprep.subr.bf16.mxu1 %v3323_v18  ;;  %v2998_v17 = vcombine.low %v63_v5, %v67_v6  ;;  %v3005_v18 = vcombine.high %v70_v11, %v74_v12  ;;  %v3007_v19 = vcombine.high %v71_v14, %v75_v15  ;;  %v126_v5 = vld [vmem:[#allocation5 + $0x210] sm:$0xff] }
  0xde   :  { %v130_v6 = vld [vmem:[#allocation5 + $0x230] sm:$0xff] }
  0xe0   :  { %2541 = vmatpush1.bf16.msra.mxu0 %v3320_v23  ;;  %2670 = vmatpush1.bf16.msra.mxu1 %v3322_v24  ;;  %v83_v23 = vld [vmem:[#allocation5 + $0xb8] sm:$0xff]  ;;  %v3004_v24 = vcombine.low %v70_v11, %v74_v12  ;;  %v3061_v11 = vcombine.high %v126_v5, %v130_v6 }
  0xe1   :  { %2542 = vmatprep.subr.bf16.mxu0 %v3329_v25  ;;  %2671 = vmatprep.subr.bf16.mxu1 %v3331_v26  ;;  %v3006_v25 = vcombine.low %v71_v14, %v75_v15  ;;  %v3013_v26 = vcombine.high %v78_v20, %v82_v21  ;;  %v3015_v27 = vcombine.high %v79_v22, %v83_v23  ;;  %v138_v14 = vld [vmem:[#allocation5 + $0x270] sm:$0xff]  ;;  %v135_v15 = vld [vmem:[#allocation5 + $0x258] sm:$0xff] }
  0xe4   :  { %2543 = vmatpush1.bf16.msra.mxu0 %v3328_v31  ;;  %2672 = vmatpush1.bf16.msra.mxu1 %v3330_v32  ;;  %v87_v31 = vld [vmem:[#allocation5 + $0xd8] sm:$0xff] }
  0xe5   :  { %2544 = vmatprep.subr.bf16.mxu0 %v3337_v33  ;;  %2673 = vmatprep.subr.bf16.mxu1 %v3339_v34  ;;  %v91_v32 = vld [vmem:[#allocation5 + $0xf8] sm:$0xff]  ;;  %v3012_v33 = vcombine.low %v78_v20, %v82_v21  ;;  %v3014_v34 = vcombine.low %v79_v22, %v83_v23  ;;  %v142_v21 = vld [vmem:[#allocation5 + $0x290] sm:$0xff] }
  0xe6   :  { %v3023_v36 = vcombine.high %v87_v31, %v91_v32  ;;  %v146_v22 = vld [vmem:[#allocation5 + $0x2b0] sm:$0xff]  ;;  %v143_v23 = vld [vmem:[#allocation5 + $0x298] sm:$0xff] }
  0xe8   :  { %2545 = vmatpush1.bf16.msra.mxu0 %v3336_v39  ;;  %2674 = vmatpush1.bf16.msra.mxu1 %v3338_v40  ;;  %v95_v39 = vld [vmem:[#allocation5 + $0x118] sm:$0xff] }
  0xe9   :  { %2546 = vmatprep.subr.bf16.mxu0 %v3345_v41  ;;  %2675 = vmatprep.subr.bf16.mxu1 %v3347_v42  ;;  %v99_v40 = vld [vmem:[#allocation5 + $0x138] sm:$0xff]  ;;  %v3020_v41 = vcombine.low %v86_v28, %v90_v29  ;;  %v3022_v42 = vcombine.low %v87_v31, %v91_v32  ;;  %v150_v29 = vld [vmem:[#allocation5 + $0x2d0] sm:$0xff] }
  0xea   :  { %v3031_v44 = vcombine.high %v95_v39, %v99_v40  ;;  %v151_v31 = vld [vmem:[#allocation5 + $0x2d8] sm:$0xff] }
  0xeb   :  { %v155_v32 = vld [vmem:[#allocation5 + $0x2f8] sm:$0xff] }
  0xec   :  { %2547 = vmatpush1.bf16.msra.mxu0 %v3344_v47  ;;  %2676 = vmatpush1.bf16.msra.mxu1 %v3346_v48  ;;  %v103_v47 = vld [vmem:[#allocation5 + $0x158] sm:$0xff] }
  0xed   :  { %2548 = vmatprep.subr.bf16.mxu0 %v3353_v49  ;;  %2677 = vmatprep.subr.bf16.mxu1 %v3355_v50  ;;  %v107_v48 = vld [vmem:[#allocation5 + $0x178] sm:$0xff]  ;;  %v3028_v49 = vcombine.low %v94_v37, %v98_v38  ;;  %v3030_v50 = vcombine.low %v95_v39, %v99_v40  ;;  %v158_v37 = vld [vmem:[#allocation5 + $0x310] sm:$0xff] }
  0xee   :  { %v3039_v52 = vcombine.high %v103_v47, %v107_v48  ;;  %v162_v38 = vld [vmem:[#allocation5 + $0x330] sm:$0xff]  ;;  %v159_v39 = vld [vmem:[#allocation5 + $0x318] sm:$0xff] }
  0xef   :  { %v163_v40 = vld [vmem:[#allocation5 + $0x338] sm:$0xff] }
  0xf0   :  { %2549 = vmatpush1.bf16.msra.mxu0 %v3352_v55  ;;  %2678 = vmatpush1.bf16.msra.mxu1 %v3354_v56  ;;  %v111_v55 = vld [vmem:[#allocation5 + $0x198] sm:$0xff] }
  0xf1   :  { %2550 = vmatprep.subr.bf16.mxu0 %v3361_v57  ;;  %2679 = vmatprep.subr.bf16.mxu1 %v3363_v58  ;;  %v115_v56 = vld [vmem:[#allocation5 + $0x1b8] sm:$0xff]  ;;  %v3036_v57 = vcombine.low %v102_v45, %v106_v46  ;;  %v3038_v58 = vcombine.low %v103_v47, %v107_v48  ;;  %v166_v45 = vld [vmem:[#allocation5 + $0x350] sm:$0xff] }
  0xf2   :  { %v3047_v60 = vcombine.high %v111_v55, %v115_v56  ;;  %v170_v46 = vld [vmem:[#allocation5 + $0x370] sm:$0xff]  ;;  %v167_v47 = vld [vmem:[#allocation5 + $0x358] sm:$0xff] }
  0xf3   :  { %v171_v48 = vld [vmem:[#allocation5 + $0x378] sm:$0xff] }
  0xf4   :  { %2551 = vmatpush1.bf16.msra.mxu0 %v3360_v63  ;;  %2680 = vmatpush1.bf16.msra.mxu1 %v3362_v0  ;;  %v119_v63 = vld [vmem:[#allocation5 + $0x1d8] sm:$0xff] }
  0xf5   :  { %2552 = vmatprep.subr.bf16.mxu0 %v3369_v1  ;;  %2681 = vmatprep.subr.bf16.mxu1 %v3371_v2  ;;  %v123_v0 = vld [vmem:[#allocation5 + $0x1f8] sm:$0xff]  ;;  %v3044_v1 = vcombine.low %v110_v53, %v114_v54  ;;  %v3046_v2 = vcombine.low %v111_v55, %v115_v56  ;;  %v174_v53 = vld [vmem:[#allocation5 + $0x390] sm:$0xff] }
  0xf6   :  { %v3055_v4 = vcombine.high %v119_v63, %v123_v0  ;;  %v178_v54 = vld [vmem:[#allocation5 + $0x3b0] sm:$0xff]  ;;  %v175_v55 = vld [vmem:[#allocation5 + $0x398] sm:$0xff] }
  0xf7   :  { %v179_v56 = vld [vmem:[#allocation5 + $0x3b8] sm:$0xff] }
  0xf8   :  { %2553 = vmatpush1.bf16.msra.mxu0 %v3368_v7  ;;  %2682 = vmatpush1.bf16.msra.mxu1 %v3370_v8  ;;  %v127_v7 = vld [vmem:[#allocation5 + $0x218] sm:$0xff] }
  0xf9   :  { %2694 = vmatprep.subr.bf16.mxu0 %v2997_v9  ;;  %2823 = vmatprep.subr.bf16.mxu1 %v2999_v10  ;;  %v131_v8 = vld [vmem:[#allocation5 + $0x238] sm:$0xff]  ;;  %v3052_v9 = vcombine.low %v118_v61, %v122_v62  ;;  %v3054_v10 = vcombine.low %v119_v63, %v123_v0  ;;  %v182_v61 = vld [vmem:[#allocation5 + $0x3d0] sm:$0xff] }
  0xfa   :  { %v3063_v12 = vcombine.high %v127_v7, %v131_v8  ;;  %v186_v62 = vld [vmem:[#allocation5 + $0x3f0] sm:$0xff]  ;;  %v183_v63 = vld [vmem:[#allocation5 + $0x3d8] sm:$0xff] }
  0xfb   :  { %2555 = vmatmul.mubr.bf16.vlgmr.msra.gmra.mrb[0].mxu0 %v3442_v13  ;;  %2684 = vmatmul.mubr.bf16.vlgmr.msra.gmra.mrb[0].mxu1 %v3442_v13  ;;  %v134_v13 = vld [vmem:[#allocation5 + $0x250] sm:$0xff]  ;;  %v187_v0 = vld [vmem:[#allocation5 + $0x3f8] sm:$0xff] }
  0xfc   :  { %2695 = vmatpush1.bf16.msra.mxu0 %v2996_v16  ;;  %2824 = vmatpush1.bf16.msra.mxu1 %v2998_v17  ;;  %v139_v16 = vld [vmem:[#allocation5 + $0x278] sm:$0xff]  ;;  %v3060_v17 = vcombine.low %v126_v5, %v130_v6  ;;  %v190_v5 = vld [vmem:[#allocation5 + $0x410] sm:$0xff] }
  0xfd   :  { %2696 = vmatprep.subr.bf16.mxu0 %v3005_v18  ;;  %2825 = vmatprep.subr.bf16.mxu1 %v3007_v19  ;;  %v3062_v18 = vcombine.low %v127_v7, %v131_v8  ;;  %v3069_v19 = vcombine.high %v134_v13, %v138_v14  ;;  %v3071_v20 = vcombine.high %v135_v15, %v139_v16  ;;  %v194_v6 = vld [vmem:[#allocation5 + $0x430] sm:$0xff]  ;;  %v191_v7 = vld [vmem:[#allocation5 + $0x418] sm:$0xff] }
  0xfe   :  { %2726 = vmatprep.mubr.bf16.mxu0 %v3443_v30  ;;  %2855 = vmatprep.mubr.bf16.mxu1 %v3443_v30  ;;  %v154_v30 = vld [vmem:[#allocation5 + $0x2f0] sm:$0xff]  ;;  %v195_v8 = vld [vmem:[#allocation5 + $0x438] sm:$0xff] }
 0x100   :  { %2697 = vmatpush1.bf16.msra.mxu0 %v3004_v24  ;;  %2826 = vmatpush1.bf16.msra.mxu1 %v3006_v25  ;;  %v147_v24 = vld [vmem:[#allocation5 + $0x2b8] sm:$0xff]  ;;  %v3068_v25 = vcombine.low %v134_v13, %v138_v14  ;;  %v198_v13 = vld [vmem:[#allocation5 + $0x450] sm:$0xff] }
 0x101   :  { %2698 = vmatprep.subr.bf16.mxu0 %v3013_v26  ;;  %2827 = vmatprep.subr.bf16.mxu1 %v3015_v27  ;;  %v3070_v26 = vcombine.low %v135_v15, %v139_v16  ;;  %v3077_v27 = vcombine.high %v142_v21, %v146_v22  ;;  %v3079_v28 = vcombine.high %v143_v23, %v147_v24  ;;  %v202_v14 = vld [vmem:[#allocation5 + $0x470] sm:$0xff]  ;;  %v199_v15 = vld [vmem:[#allocation5 + $0x458] sm:$0xff] }
 0x102   :  { %v203_v16 = vld [vmem:[#allocation5 + $0x478] sm:$0xff] }
 0x104   :  { %2699 = vmatpush1.bf16.msra.mxu0 %v3012_v33  ;;  %2828 = vmatpush1.bf16.msra.mxu1 %v3014_v34  ;;  %v3076_v33 = vcombine.low %v142_v21, %v146_v22  ;;  %v3078_v34 = vcombine.low %v143_v23, %v147_v24  ;;  %v206_v21 = vld [vmem:[#allocation5 + $0x490] sm:$0xff]  ;;  %v207_v24 = vld [vmem:[#allocation5 + $0x498] sm:$0xff] }
 0x105   :  { %2700 = vmatprep.subr.bf16.mxu0 %v3021_v35  ;;  %2829 = vmatprep.subr.bf16.mxu1 %v3023_v36  ;;  %v3085_v35 = vcombine.high %v150_v29, %v154_v30  ;;  %v3087_v36 = vcombine.high %v151_v31, %v155_v32  ;;  %v210_v22 = vld [vmem:[#allocation5 + $0x4b0] sm:$0xff] }
 0x106   :  { %v3444_v23 = vld [vmem:[#allocation2] ss:$24 sps:$4 sm:$0xff]  }
 0x108   :  { %2701 = vmatpush1.bf16.msra.mxu0 %v3020_v41  ;;  %2830 = vmatpush1.bf16.msra.mxu1 %v3022_v42  ;;  %v3084_v41 = vcombine.low %v150_v29, %v154_v30  ;;  %v3086_v42 = vcombine.low %v151_v31, %v155_v32  ;;  %v214_v30 = vld [vmem:[#allocation5 + $0x4d0] sm:$0xff] }
 0x109   :  { %2702 = vmatprep.subr.bf16.mxu0 %v3029_v43  ;;  %2831 = vmatprep.subr.bf16.mxu1 %v3031_v44  ;;  %v3093_v43 = vcombine.high %v158_v37, %v162_v38  ;;  %v3095_v44 = vcombine.high %v159_v39, %v163_v40  ;;  %v218_v31 = vld [vmem:[#allocation5 + $0x4f0] sm:$0xff] }
 0x10a   :  { %v3445_v32 = vld [vmem:[#allocation2 + $0xc] ss:$24 sps:$4 sm:$0xff]  }
 0x10c   :  { %2703 = vmatpush1.bf16.msra.mxu0 %v3028_v49  ;;  %2832 = vmatpush1.bf16.msra.mxu1 %v3030_v50  ;;  %v3092_v49 = vcombine.low %v158_v37, %v162_v38  ;;  %v3094_v50 = vcombine.low %v159_v39, %v163_v40  ;;  %v3149_v37 = vcombine.high %v214_v30, %v218_v31  ;;  %v222_v39 = vld [vmem:[#allocation5 + $0x510] sm:$0xff] }
 0x10d   :  { %2704 = vmatprep.subr.bf16.mxu0 %v3037_v51  ;;  %2833 = vmatprep.subr.bf16.mxu1 %v3039_v52  ;;  %v3101_v51 = vcombine.high %v166_v45, %v170_v46  ;;  %v3103_v52 = vcombine.high %v167_v47, %v171_v48  ;;  %v226_v40 = vld [vmem:[#allocation5 + $0x530] sm:$0xff] }
 0x110   :  { %2705 = vmatpush1.bf16.msra.mxu0 %v3036_v57  ;;  %2834 = vmatpush1.bf16.msra.mxu1 %v3038_v58  ;;  %v3100_v57 = vcombine.low %v166_v45, %v170_v46  ;;  %v3102_v58 = vcombine.low %v167_v47, %v171_v48  ;;  %v3157_v45 = vcombine.high %v222_v39, %v226_v40  ;;  %v230_v47 = vld [vmem:[#allocation5 + $0x550] sm:$0xff] }
 0x111   :  { %2706 = vmatprep.subr.bf16.mxu0 %v3045_v59  ;;  %2835 = vmatprep.subr.bf16.mxu1 %v3047_v60  ;;  %v3109_v59 = vcombine.high %v174_v53, %v178_v54  ;;  %v3111_v60 = vcombine.high %v175_v55, %v179_v56  ;;  %v234_v48 = vld [vmem:[#allocation5 + $0x570] sm:$0xff] }
 0x114   :  { %2707 = vmatpush1.bf16.msra.mxu0 %v3044_v1  ;;  %2836 = vmatpush1.bf16.msra.mxu1 %v3046_v2  ;;  %v3108_v1 = vcombine.low %v174_v53, %v178_v54  ;;  %v3110_v2 = vcombine.low %v175_v55, %v179_v56  ;;  %v3165_v53 = vcombine.high %v230_v47, %v234_v48  ;;  %v238_v55 = vld [vmem:[#allocation5 + $0x590] sm:$0xff] }
 0x115   :  { %2708 = vmatprep.subr.bf16.mxu0 %v3053_v3  ;;  %2837 = vmatprep.subr.bf16.mxu1 %v3055_v4  ;;  %v3117_v3 = vcombine.high %v182_v61, %v186_v62  ;;  %v3119_v4 = vcombine.high %v183_v63, %v187_v0  ;;  %v242_v56 = vld [vmem:[#allocation5 + $0x5b0] sm:$0xff] }
 0x118   :  { %2709 = vmatpush1.bf16.msra.mxu0 %v3052_v9  ;;  %2838 = vmatpush1.bf16.msra.mxu1 %v3054_v10  ;;  %v3116_v9 = vcombine.low %v182_v61, %v186_v62  ;;  %v3118_v10 = vcombine.low %v183_v63, %v187_v0  ;;  %v3173_v61 = vcombine.high %v238_v55, %v242_v56  ;;  %v246_v63 = vld [vmem:[#allocation5 + $0x5d0] sm:$0xff] }
 0x119   :  { %2710 = vmatprep.subr.bf16.mxu0 %v3061_v11  ;;  %2839 = vmatprep.subr.bf16.mxu1 %v3063_v12  ;;  %v3125_v11 = vcombine.high %v190_v5, %v194_v6  ;;  %v3127_v12 = vcombine.high %v191_v7, %v195_v8  ;;  %v250_v0 = vld [vmem:[#allocation5 + $0x5f0] sm:$0xff] }
 0x11c   :  { %2711 = vmatpush1.bf16.msra.mxu0 %v3060_v17  ;;  %2840 = vmatpush1.bf16.msra.mxu1 %v3062_v18  ;;  %v3124_v17 = vcombine.low %v190_v5, %v194_v6  ;;  %v3126_v18 = vcombine.low %v191_v7, %v195_v8  ;;  %v3181_v5 = vcombine.high %v246_v63, %v250_v0  ;;  %v254_v7 = vld [vmem:[#allocation5 + $0x610] sm:$0xff] }
 0x11d   :  { %2712 = vmatprep.subr.bf16.mxu0 %v3069_v19  ;;  %2841 = vmatprep.subr.bf16.mxu1 %v3071_v20  ;;  %v3133_v19 = vcombine.high %v198_v13, %v202_v14  ;;  %v3135_v20 = vcombine.high %v199_v15, %v203_v16  ;;  %v258_v8 = vld [vmem:[#allocation5 + $0x630] sm:$0xff] }
 0x120   :  { %2713 = vmatpush1.bf16.msra.mxu0 %v3068_v25  ;;  %2842 = vmatpush1.bf16.msra.mxu1 %v3070_v26  ;;  %v211_v25 = vld [vmem:[#allocation5 + $0x4b8] sm:$0xff]  ;;  %v3132_v26 = vcombine.low %v198_v13, %v202_v14  ;;  %v3189_v13 = vcombine.high %v254_v7, %v258_v8 }
 0x121   :  { %2714 = vmatprep.subr.bf16.mxu0 %v3077_v27  ;;  %2843 = vmatprep.subr.bf16.mxu1 %v3079_v28  ;;  %v3134_v27 = vcombine.low %v199_v15, %v203_v16  ;;  %v3141_v28 = vcombine.high %v206_v21, %v210_v22  ;;  %v3143_v29 = vcombine.high %v207_v24, %v211_v25  ;;  %v262_v15 = vld [vmem:[#allocation5 + $0x650] sm:$0xff] }
 0x122   :  { %v266_v16 = vld [vmem:[#allocation5 + $0x670] sm:$0xff] }
 0x124   :  { %2715 = vmatpush1.bf16.msra.mxu0 %v3076_v33  ;;  %2844 = vmatpush1.bf16.msra.mxu1 %v3078_v34  ;;  %v215_v33 = vld [vmem:[#allocation5 + $0x4d8] sm:$0xff] }
 0x125   :  { %2716 = vmatprep.subr.bf16.mxu0 %v3085_v35  ;;  %2845 = vmatprep.subr.bf16.mxu1 %v3087_v36  ;;  %v219_v34 = vld [vmem:[#allocation5 + $0x4f8] sm:$0xff]  ;;  %v3140_v35 = vcombine.low %v206_v21, %v210_v22  ;;  %v3142_v36 = vcombine.low %v207_v24, %v211_v25  ;;  %v3197_v21 = vcombine.high %v262_v15, %v266_v16  ;;  %v274_v24 = vld [vmem:[#allocation5 + $0x6b0] sm:$0xff] }
 0x126   :  { %v3151_v38 = vcombine.high %v215_v33, %v219_v34  ;;  %v271_v25 = vld [vmem:[#allocation5 + $0x698] sm:$0xff] }
 0x128   :  { %2717 = vmatpush1.bf16.msra.mxu0 %v3084_v41  ;;  %2846 = vmatpush1.bf16.msra.mxu1 %v3086_v42  ;;  %v223_v41 = vld [vmem:[#allocation5 + $0x518] sm:$0xff] }
 0x129   :  { %2718 = vmatprep.subr.bf16.mxu0 %v3093_v43  ;;  %2847 = vmatprep.subr.bf16.mxu1 %v3095_v44  ;;  %v227_v42 = vld [vmem:[#allocation5 + $0x538] sm:$0xff]  ;;  %v3148_v43 = vcombine.low %v214_v30, %v218_v31  ;;  %v3150_v44 = vcombine.low %v215_v33, %v219_v34  ;;  %v278_v31 = vld [vmem:[#allocation5 + $0x6d0] sm:$0xff] }
 0x12a   :  { %v3159_v46 = vcombine.high %v223_v41, %v227_v42  ;;  %v279_v33 = vld [vmem:[#allocation5 + $0x6d8] sm:$0xff] }
 0x12b   :  { %v283_v34 = vld [vmem:[#allocation5 + $0x6f8] sm:$0xff] }
 0x12c   :  { %2719 = vmatpush1.bf16.msra.mxu0 %v3092_v49  ;;  %2848 = vmatpush1.bf16.msra.mxu1 %v3094_v50  ;;  %v231_v49 = vld [vmem:[#allocation5 + $0x558] sm:$0xff] }
 0x12d   :  { %2720 = vmatprep.subr.bf16.mxu0 %v3101_v51  ;;  %2849 = vmatprep.subr.bf16.mxu1 %v3103_v52  ;;  %v235_v50 = vld [vmem:[#allocation5 + $0x578] sm:$0xff]  ;;  %v3156_v51 = vcombine.low %v222_v39, %v226_v40  ;;  %v3158_v52 = vcombine.low %v223_v41, %v227_v42  ;;  %v286_v39 = vld [vmem:[#allocation5 + $0x710] sm:$0xff] }
 0x12e   :  { %v3167_v54 = vcombine.high %v231_v49, %v235_v50  ;;  %v290_v40 = vld [vmem:[#allocation5 + $0x730] sm:$0xff]  ;;  %v287_v41 = vld [vmem:[#allocation5 + $0x718] sm:$0xff] }
 0x12f   :  { %v291_v42 = vld [vmem:[#allocation5 + $0x738] sm:$0xff] }
 0x130   :  { %2721 = vmatpush1.bf16.msra.mxu0 %v3100_v57  ;;  %2850 = vmatpush1.bf16.msra.mxu1 %v3102_v58  ;;  %v239_v57 = vld [vmem:[#allocation5 + $0x598] sm:$0xff] }
 0x131   :  { %2722 = vmatprep.subr.bf16.mxu0 %v3109_v59  ;;  %2851 = vmatprep.subr.bf16.mxu1 %v3111_v60  ;;  %v243_v58 = vld [vmem:[#allocation5 + $0x5b8] sm:$0xff]  ;;  %v3164_v59 = vcombine.low %v230_v47, %v234_v48  ;;  %v3166_v60 = vcombine.low %v231_v49, %v235_v50  ;;  %v294_v47 = vld [vmem:[#allocation5 + $0x750] sm:$0xff] }
 0x132   :  { %v3175_v62 = vcombine.high %v239_v57, %v243_v58  ;;  %v298_v48 = vld [vmem:[#allocation5 + $0x770] sm:$0xff]  ;;  %v295_v49 = vld [vmem:[#allocation5 + $0x758] sm:$0xff] }
 0x133   :  { %v299_v50 = vld [vmem:[#allocation5 + $0x778] sm:$0xff] }
 0x134   :  { %2723 = vmatpush1.bf16.msra.mxu0 %v3108_v1  ;;  %2852 = vmatpush1.bf16.msra.mxu1 %v3110_v2  ;;  %v247_v1 = vld [vmem:[#allocation5 + $0x5d8] sm:$0xff] }
 0x135   :  { %2724 = vmatprep.subr.bf16.mxu0 %v3117_v3  ;;  %2853 = vmatprep.subr.bf16.mxu1 %v3119_v4  ;;  %v251_v2 = vld [vmem:[#allocation5 + $0x5f8] sm:$0xff]  ;;  %v3172_v3 = vcombine.low %v238_v55, %v242_v56  ;;  %v3174_v4 = vcombine.low %v239_v57, %v243_v58  ;;  %v302_v55 = vld [vmem:[#allocation5 + $0x790] sm:$0xff] }
 0x136   :  { %v3183_v6 = vcombine.high %v247_v1, %v251_v2  ;;  %v306_v56 = vld [vmem:[#allocation5 + $0x7b0] sm:$0xff]  ;;  %v303_v57 = vld [vmem:[#allocation5 + $0x798] sm:$0xff] }
 0x137   :  { %v307_v58 = vld [vmem:[#allocation5 + $0x7b8] sm:$0xff] }
 0x138   :  { %2725 = vmatpush1.bf16.msra.mxu0 %v3116_v9  ;;  %2854 = vmatpush1.bf16.msra.mxu1 %v3118_v10  ;;  %v255_v9 = vld [vmem:[#allocation5 + $0x618] sm:$0xff] }
 0x139   :  { %2737 = vmatprep.subr.bf16.mxu0 %v3125_v11  ;;  %2866 = vmatprep.subr.bf16.mxu1 %v3127_v12  ;;  %v259_v10 = vld [vmem:[#allocation5 + $0x638] sm:$0xff]  ;;  %v3180_v11 = vcombine.low %v246_v63, %v250_v0  ;;  %v3182_v12 = vcombine.low %v247_v1, %v251_v2  ;;  %v310_v63 = vld [vmem:[#allocation5 + $0x7d0] sm:$0xff] }
 0x13a   :  { %v3191_v14 = vcombine.high %v255_v9, %v259_v10  ;;  %v314_v0 = vld [vmem:[#allocation5 + $0x7f0] sm:$0xff]  ;;  %v311_v1 = vld [vmem:[#allocation5 + $0x7d8] sm:$0xff] }
 0x13b   :  { %2727 = vmatmul.mubr.bf16.vlgmr.msra.gmra.mrb[4].mxu0 %v3444_v23  ;;  %2856 = vmatmul.mubr.bf16.vlgmr.msra.gmra.mrb[4].mxu1 %v3444_v23  ;;  %v270_v23 = vld [vmem:[#allocation5 + $0x690] sm:$0xff]  ;;  %v315_v2 = vld [vmem:[#allocation5 + $0x7f8] sm:$0xff] }
 0x13c   :  { %2738 = vmatpush1.bf16.msra.mxu0 %v3124_v17  ;;  %2867 = vmatpush1.bf16.msra.mxu1 %v3126_v18  ;;  %v263_v17 = vld [vmem:[#allocation5 + $0x658] sm:$0xff] }
 0x13d   :  { %2739 = vmatprep.subr.bf16.mxu0 %v3133_v19  ;;  %2868 = vmatprep.subr.bf16.mxu1 %v3135_v20  ;;  %v267_v18 = vld [vmem:[#allocation5 + $0x678] sm:$0xff]  ;;  %v3188_v19 = vcombine.low %v254_v7, %v258_v8  ;;  %v3190_v20 = vcombine.low %v255_v9, %v259_v10  ;;  %v318_v7 = vld [vmem:[#allocation5 + $0x810] sm:$0xff] }
 0x13e   :  { %2769 = vmatprep.mubr.bf16.mxu0 %v3445_v32  ;;  %2898 = vmatprep.mubr.bf16.mxu1 %v3445_v32  ;;  %v3199_v22 = vcombine.high %v263_v17, %v267_v18  ;;  %v282_v32 = vld [vmem:[#allocation5 + $0x6f0] sm:$0xff]  ;;  %v319_v9 = vld [vmem:[#allocation5 + $0x818] sm:$0xff] }
 0x13f   :  { %v322_v8 = vld [vmem:[#allocation5 + $0x830] sm:$0xff]  ;;  %v323_v10 = vld [vmem:[#allocation5 + $0x838] sm:$0xff] }
 0x140   :  { %2740 = vmatpush1.bf16.msra.mxu0 %v3132_v26  ;;  %2869 = vmatpush1.bf16.msra.mxu1 %v3134_v27  ;;  %v275_v26 = vld [vmem:[#allocation5 + $0x6b8] sm:$0xff]  ;;  %v3196_v27 = vcombine.low %v262_v15, %v266_v16  ;;  %v326_v15 = vld [vmem:[#allocation5 + $0x850] sm:$0xff] }
 0x141   :  { %2741 = vmatprep.subr.bf16.mxu0 %v3141_v28  ;;  %2870 = vmatprep.subr.bf16.mxu1 %v3143_v29  ;;  %v3198_v28 = vcombine.low %v263_v17, %v267_v18  ;;  %v3205_v29 = vcombine.high %v270_v23, %v274_v24  ;;  %v3207_v30 = vcombine.high %v271_v25, %v275_v26  ;;  %v330_v16 = vld [vmem:[#allocation5 + $0x870] sm:$0xff]  ;;  %v327_v17 = vld [vmem:[#allocation5 + $0x858] sm:$0xff] }
 0x142   :  { %v331_v18 = vld [vmem:[#allocation5 + $0x878] sm:$0xff] }
 0x144   :  { %2742 = vmatpush1.bf16.msra.mxu0 %v3140_v35  ;;  %2871 = vmatpush1.bf16.msra.mxu1 %v3142_v36  ;;  %v3204_v35 = vcombine.low %v270_v23, %v274_v24  ;;  %v3206_v36 = vcombine.low %v271_v25, %v275_v26  ;;  %v334_v23 = vld [vmem:[#allocation5 + $0x890] sm:$0xff]  ;;  %v335_v26 = vld [vmem:[#allocation5 + $0x898] sm:$0xff] }
 0x145   :  { %2743 = vmatprep.subr.bf16.mxu0 %v3149_v37  ;;  %2872 = vmatprep.subr.bf16.mxu1 %v3151_v38  ;;  %v3213_v37 = vcombine.high %v278_v31, %v282_v32  ;;  %v3215_v38 = vcombine.high %v279_v33, %v283_v34  ;;  %v338_v24 = vld [vmem:[#allocation5 + $0x8b0] sm:$0xff] }
 0x146   :  { %v3446_v25 = vld [vmem:[#allocation2 + $0x8] ss:$24 sps:$4 sm:$0xff]  }
 0x148   :  { %2744 = vmatpush1.bf16.msra.mxu0 %v3148_v43  ;;  %2873 = vmatpush1.bf16.msra.mxu1 %v3150_v44  ;;  %v3212_v43 = vcombine.low %v278_v31, %v282_v32  ;;  %v3214_v44 = vcombine.low %v279_v33, %v283_v34  ;;  %v342_v32 = vld [vmem:[#allocation5 + $0x8d0] sm:$0xff]  ;;  %v3447_v34 = vld [vmem:[#allocation2 + $0x14] ss:$24 sps:$4 sm:$0xff]  }
 0x149   :  { %2745 = vmatprep.subr.bf16.mxu0 %v3157_v45  ;;  %2874 = vmatprep.subr.bf16.mxu1 %v3159_v46  ;;  %v3221_v45 = vcombine.high %v286_v39, %v290_v40  ;;  %v3223_v46 = vcombine.high %v287_v41, %v291_v42  ;;  %v346_v33 = vld [vmem:[#allocation5 + $0x8f0] sm:$0xff] }
 0x14c   :  { %2746 = vmatpush1.bf16.msra.mxu0 %v3156_v51  ;;  %2875 = vmatpush1.bf16.msra.mxu1 %v3158_v52  ;;  %v3220_v51 = vcombine.low %v286_v39, %v290_v40  ;;  %v3222_v52 = vcombine.low %v287_v41, %v291_v42  ;;  %v3277_v39 = vcombine.high %v342_v32, %v346_v33  ;;  %v350_v41 = vld [vmem:[#allocation5 + $0x910] sm:$0xff] }
 0x14d   :  { %2747 = vmatprep.subr.bf16.mxu0 %v3165_v53  ;;  %2876 = vmatprep.subr.bf16.mxu1 %v3167_v54  ;;  %v3229_v53 = vcombine.high %v294_v47, %v298_v48  ;;  %v3231_v54 = vcombine.high %v295_v49, %v299_v50  ;;  %v354_v42 = vld [vmem:[#allocation5 + $0x930] sm:$0xff] }
 0x150   :  { %2748 = vmatpush1.bf16.msra.mxu0 %v3164_v59  ;;  %2877 = vmatpush1.bf16.msra.mxu1 %v3166_v60  ;;  %v3228_v59 = vcombine.low %v294_v47, %v298_v48  ;;  %v3230_v60 = vcombine.low %v295_v49, %v299_v50  ;;  %v3285_v47 = vcombine.high %v350_v41, %v354_v42  ;;  %v358_v49 = vld [vmem:[#allocation5 + $0x950] sm:$0xff] }
 0x151   :  { %2749 = vmatprep.subr.bf16.mxu0 %v3173_v61  ;;  %2878 = vmatprep.subr.bf16.mxu1 %v3175_v62  ;;  %v3237_v61 = vcombine.high %v302_v55, %v306_v56  ;;  %v3239_v62 = vcombine.high %v303_v57, %v307_v58  ;;  %v362_v50 = vld [vmem:[#allocation5 + $0x970] sm:$0xff] }
 0x154   :  { %2750 = vmatpush1.bf16.msra.mxu0 %v3172_v3  ;;  %2879 = vmatpush1.bf16.msra.mxu1 %v3174_v4  ;;  %v3236_v3 = vcombine.low %v302_v55, %v306_v56  ;;  %v3238_v4 = vcombine.low %v303_v57, %v307_v58  ;;  %v3293_v55 = vcombine.high %v358_v49, %v362_v50  ;;  %v366_v57 = vld [vmem:[#allocation5 + $0x990] sm:$0xff] }
 0x155   :  { %2751 = vmatprep.subr.bf16.mxu0 %v3181_v5  ;;  %2880 = vmatprep.subr.bf16.mxu1 %v3183_v6  ;;  %v3245_v5 = vcombine.high %v310_v63, %v314_v0  ;;  %v3247_v6 = vcombine.high %v311_v1, %v315_v2  ;;  %v370_v58 = vld [vmem:[#allocation5 + $0x9b0] sm:$0xff] }
 0x158   :  { %2752 = vmatpush1.bf16.msra.mxu0 %v3180_v11  ;;  %2881 = vmatpush1.bf16.msra.mxu1 %v3182_v12  ;;  %v3244_v11 = vcombine.low %v310_v63, %v314_v0  ;;  %v3246_v12 = vcombine.low %v311_v1, %v315_v2  ;;  %v3301_v63 = vcombine.high %v366_v57, %v370_v58  ;;  %v374_v1 = vld [vmem:[#allocation5 + $0x9d0] sm:$0xff] }
 0x159   :  { %2753 = vmatprep.subr.bf16.mxu0 %v3189_v13  ;;  %2882 = vmatprep.subr.bf16.mxu1 %v3191_v14  ;;  %v3253_v13 = vcombine.high %v318_v7, %v322_v8  ;;  %v3255_v14 = vcombine.high %v319_v9, %v323_v10  ;;  %v378_v2 = vld [vmem:[#allocation5 + $0x9f0] sm:$0xff] }
 0x15c   :  { %2754 = vmatpush1.bf16.msra.mxu0 %v3188_v19  ;;  %2883 = vmatpush1.bf16.msra.mxu1 %v3190_v20  ;;  %v3252_v19 = vcombine.low %v318_v7, %v322_v8  ;;  %v3254_v20 = vcombine.low %v319_v9, %v323_v10  ;;  %v3309_v7 = vcombine.high %v374_v1, %v378_v2  ;;  %v382_v9 = vld [vmem:[#allocation5 + $0xa10] sm:$0xff] }
 0x15d   :  { %2755 = vmatprep.subr.bf16.mxu0 %v3197_v21  ;;  %2884 = vmatprep.subr.bf16.mxu1 %v3199_v22  ;;  %v3261_v21 = vcombine.high %v326_v15, %v330_v16  ;;  %v3263_v22 = vcombine.high %v327_v17, %v331_v18  ;;  %v386_v10 = vld [vmem:[#allocation5 + $0xa30] sm:$0xff] }
 0x160   :  { %2756 = vmatpush1.bf16.msra.mxu0 %v3196_v27  ;;  %2885 = vmatpush1.bf16.msra.mxu1 %v3198_v28  ;;  %v339_v27 = vld [vmem:[#allocation5 + $0x8b8] sm:$0xff]  ;;  %v3260_v28 = vcombine.low %v326_v15, %v330_v16  ;;  %v3317_v15 = vcombine.high %v382_v9, %v386_v10 }
 0x161   :  { %2757 = vmatprep.subr.bf16.mxu0 %v3205_v29  ;;  %2886 = vmatprep.subr.bf16.mxu1 %v3207_v30  ;;  %v3262_v29 = vcombine.low %v327_v17, %v331_v18  ;;  %v3269_v30 = vcombine.high %v334_v23, %v338_v24  ;;  %v3271_v31 = vcombine.high %v335_v26, %v339_v27  ;;  %v390_v17 = vld [vmem:[#allocation5 + $0xa50] sm:$0xff] }
 0x162   :  { %v394_v18 = vld [vmem:[#allocation5 + $0xa70] sm:$0xff] }
 0x164   :  { %2758 = vmatpush1.bf16.msra.mxu0 %v3204_v35  ;;  %2887 = vmatpush1.bf16.msra.mxu1 %v3206_v36  ;;  %v343_v35 = vld [vmem:[#allocation5 + $0x8d8] sm:$0xff] }
 0x165   :  { %2759 = vmatprep.subr.bf16.mxu0 %v3213_v37  ;;  %2888 = vmatprep.subr.bf16.mxu1 %v3215_v38  ;;  %v347_v36 = vld [vmem:[#allocation5 + $0x8f8] sm:$0xff]  ;;  %v3268_v37 = vcombine.low %v334_v23, %v338_v24  ;;  %v3270_v38 = vcombine.low %v335_v26, %v339_v27  ;;  %v3325_v23 = vcombine.high %v390_v17, %v394_v18  ;;  %v402_v26 = vld [vmem:[#allocation5 + $0xab0] sm:$0xff] }
 0x166   :  { %v3279_v40 = vcombine.high %v343_v35, %v347_v36  ;;  %v399_v27 = vld [vmem:[#allocation5 + $0xa98] sm:$0xff] }
 0x168   :  { %2760 = vmatpush1.bf16.msra.mxu0 %v3212_v43  ;;  %2889 = vmatpush1.bf16.msra.mxu1 %v3214_v44  ;;  %v351_v43 = vld [vmem:[#allocation5 + $0x918] sm:$0xff] }
 0x169   :  { %2761 = vmatprep.subr.bf16.mxu0 %v3221_v45  ;;  %2890 = vmatprep.subr.bf16.mxu1 %v3223_v46  ;;  %v355_v44 = vld [vmem:[#allocation5 + $0x938] sm:$0xff]  ;;  %v3276_v45 = vcombine.low %v342_v32, %v346_v33  ;;  %v3278_v46 = vcombine.low %v343_v35, %v347_v36  ;;  %v406_v33 = vld [vmem:[#allocation5 + $0xad0] sm:$0xff] }
 0x16a   :  { %v3287_v48 = vcombine.high %v351_v43, %v355_v44  ;;  %v407_v35 = vld [vmem:[#allocation5 + $0xad8] sm:$0xff] }
 0x16b   :  { %v411_v36 = vld [vmem:[#allocation5 + $0xaf8] sm:$0xff] }
 0x16c   :  { %2762 = vmatpush1.bf16.msra.mxu0 %v3220_v51  ;;  %2891 = vmatpush1.bf16.msra.mxu1 %v3222_v52  ;;  %v359_v51 = vld [vmem:[#allocation5 + $0x958] sm:$0xff] }
 0x16d   :  { %2763 = vmatprep.subr.bf16.mxu0 %v3229_v53  ;;  %2892 = vmatprep.subr.bf16.mxu1 %v3231_v54  ;;  %v363_v52 = vld [vmem:[#allocation5 + $0x978] sm:$0xff]  ;;  %v3284_v53 = vcombine.low %v350_v41, %v354_v42  ;;  %v3286_v54 = vcombine.low %v351_v43, %v355_v44  ;;  %v414_v41 = vld [vmem:[#allocation5 + $0xb10] sm:$0xff] }
 0x16e   :  { %v3295_v56 = vcombine.high %v359_v51, %v363_v52  ;;  %v418_v42 = vld [vmem:[#allocation5 + $0xb30] sm:$0xff]  ;;  %v415_v43 = vld [vmem:[#allocation5 + $0xb18] sm:$0xff] }
 0x16f   :  { %v419_v44 = vld [vmem:[#allocation5 + $0xb38] sm:$0xff] }
 0x170   :  { %2764 = vmatpush1.bf16.msra.mxu0 %v3228_v59  ;;  %2893 = vmatpush1.bf16.msra.mxu1 %v3230_v60  ;;  %v367_v59 = vld [vmem:[#allocation5 + $0x998] sm:$0xff] }
 0x171   :  { %2765 = vmatprep.subr.bf16.mxu0 %v3237_v61  ;;  %2894 = vmatprep.subr.bf16.mxu1 %v3239_v62  ;;  %v371_v60 = vld [vmem:[#allocation5 + $0x9b8] sm:$0xff]  ;;  %v3292_v61 = vcombine.low %v358_v49, %v362_v50  ;;  %v3294_v62 = vcombine.low %v359_v51, %v363_v52  ;;  %v422_v49 = vld [vmem:[#allocation5 + $0xb50] sm:$0xff] }
 0x172   :  { %v3303_v0 = vcombine.high %v367_v59, %v371_v60  ;;  %v426_v50 = vld [vmem:[#allocation5 + $0xb70] sm:$0xff]  ;;  %v423_v51 = vld [vmem:[#allocation5 + $0xb58] sm:$0xff] }
 0x173   :  { %v427_v52 = vld [vmem:[#allocation5 + $0xb78] sm:$0xff] }
 0x174   :  { %2766 = vmatpush1.bf16.msra.mxu0 %v3236_v3  ;;  %2895 = vmatpush1.bf16.msra.mxu1 %v3238_v4  ;;  %v375_v3 = vld [vmem:[#allocation5 + $0x9d8] sm:$0xff] }
 0x175   :  { %2767 = vmatprep.subr.bf16.mxu0 %v3245_v5  ;;  %2896 = vmatprep.subr.bf16.mxu1 %v3247_v6  ;;  %v379_v4 = vld [vmem:[#allocation5 + $0x9f8] sm:$0xff]  ;;  %v3300_v5 = vcombine.low %v366_v57, %v370_v58  ;;  %v3302_v6 = vcombine.low %v367_v59, %v371_v60  ;;  %v430_v57 = vld [vmem:[#allocation5 + $0xb90] sm:$0xff] }
 0x176   :  { %v3311_v8 = vcombine.high %v375_v3, %v379_v4  ;;  %v434_v58 = vld [vmem:[#allocation5 + $0xbb0] sm:$0xff]  ;;  %v431_v59 = vld [vmem:[#allocation5 + $0xb98] sm:$0xff] }
 0x177   :  { %v435_v60 = vld [vmem:[#allocation5 + $0xbb8] sm:$0xff] }
 0x178   :  { %2768 = vmatpush1.bf16.msra.mxu0 %v3244_v11  ;;  %2897 = vmatpush1.bf16.msra.mxu1 %v3246_v12  ;;  %v383_v11 = vld [vmem:[#allocation5 + $0xa18] sm:$0xff] }
 0x179   :  { %2780 = vmatprep.subr.bf16.mxu0 %v3253_v13  ;;  %2909 = vmatprep.subr.bf16.mxu1 %v3255_v14  ;;  %v387_v12 = vld [vmem:[#allocation5 + $0xa38] sm:$0xff]  ;;  %v3308_v13 = vcombine.low %v374_v1, %v378_v2  ;;  %v3310_v14 = vcombine.low %v375_v3, %v379_v4  ;;  %v438_v1 = vld [vmem:[#allocation5 + $0xbd0] sm:$0xff] }
 0x17a   :  { %v3319_v16 = vcombine.high %v383_v11, %v387_v12  ;;  %v442_v2 = vld [vmem:[#allocation5 + $0xbf0] sm:$0xff]  ;;  %v439_v3 = vld [vmem:[#allocation5 + $0xbd8] sm:$0xff] }
 0x17b   :  { %2770 = vmatmul.mubr.bf16.vlgmr.msra.gmra.mrb[4].mxu0 %v3446_v25  ;;  %2899 = vmatmul.mubr.bf16.vlgmr.msra.gmra.mrb[4].mxu1 %v3446_v25  ;;  %v398_v25 = vld [vmem:[#allocation5 + $0xa90] sm:$0xff]  ;;  %v443_v4 = vld [vmem:[#allocation5 + $0xbf8] sm:$0xff] }
 0x17c   :  { %2781 = vmatpush1.bf16.msra.mxu0 %v3252_v19  ;;  %2910 = vmatpush1.bf16.msra.mxu1 %v3254_v20  ;;  %v391_v19 = vld [vmem:[#allocation5 + $0xa58] sm:$0xff] }
 0x17d   :  { %2782 = vmatprep.subr.bf16.mxu0 %v3261_v21  ;;  %2911 = vmatprep.subr.bf16.mxu1 %v3263_v22  ;;  %v395_v20 = vld [vmem:[#allocation5 + $0xa78] sm:$0xff]  ;;  %v3316_v21 = vcombine.low %v382_v9, %v386_v10  ;;  %v3318_v22 = vcombine.low %v383_v11, %v387_v12  ;;  %v3372_v9 = vcombine.low %v438_v1, %v442_v2  ;;  %v446_v12 = vlaneseq }
 0x17e   :  { %2812 = vmatprep.mubr.bf16.mxu0 %v3447_v34  ;;  %2941 = vmatprep.mubr.bf16.mxu1 %v3447_v34  ;;  %v3327_v24 = vcombine.high %v391_v19, %v395_v20  ;;  %v410_v34 = vld [vmem:[#allocation5 + $0xaf0] sm:$0xff]  ;;  %v3374_v10 = vcombine.low %v439_v3, %v443_v4  ;;  %v3448_v11 = vld [vmem:[#allocation2 + $0x10] ss:$24 sps:$4 sm:$0xff]  }
 0x180   :  { %2783 = vmatpush1.bf16.msra.mxu0 %v3260_v28  ;;  %2912 = vmatpush1.bf16.msra.mxu1 %v3262_v29  ;;  %v403_v28 = vld [vmem:[#allocation5 + $0xab8] sm:$0xff]  ;;  %v3324_v29 = vcombine.low %v390_v17, %v394_v18 }
 0x181   :  { %2784 = vmatprep.subr.bf16.mxu0 %v3269_v30  ;;  %2913 = vmatprep.subr.bf16.mxu1 %v3271_v31  ;;  %v3326_v30 = vcombine.low %v391_v19, %v395_v20  ;;  %v3333_v31 = vcombine.high %v398_v25, %v402_v26  ;;  %v3335_v32 = vcombine.high %v399_v27, %v403_v28 }
 0x184   :  { %2785 = vmatpush1.bf16.msra.mxu0 %v3268_v37  ;;  %2914 = vmatpush1.bf16.msra.mxu1 %v3270_v38  ;;  %v3332_v37 = vcombine.low %v398_v25, %v402_v26  ;;  %v3334_v38 = vcombine.low %v399_v27, %v403_v28 }
 0x185   :  { %2786 = vmatprep.subr.bf16.mxu0 %v3277_v39  ;;  %2915 = vmatprep.subr.bf16.mxu1 %v3279_v40  ;;  %v3341_v39 = vcombine.high %v406_v33, %v410_v34  ;;  %v3343_v40 = vcombine.high %v407_v35, %v411_v36 }
 0x188   :  { %2787 = vmatpush1.bf16.msra.mxu0 %v3276_v45  ;;  %2916 = vmatpush1.bf16.msra.mxu1 %v3278_v46  ;;  %v3340_v45 = vcombine.low %v406_v33, %v410_v34  ;;  %v3342_v46 = vcombine.low %v407_v35, %v411_v36 }
 0x189   :  { %2788 = vmatprep.subr.bf16.mxu0 %v3285_v47  ;;  %2917 = vmatprep.subr.bf16.mxu1 %v3287_v48  ;;  %v3349_v47 = vcombine.high %v414_v41, %v418_v42  ;;  %v3351_v48 = vcombine.high %v415_v43, %v419_v44 }
 0x18c   :  { %2789 = vmatpush1.bf16.msra.mxu0 %v3284_v53  ;;  %2918 = vmatpush1.bf16.msra.mxu1 %v3286_v54  ;;  %v3348_v53 = vcombine.low %v414_v41, %v418_v42  ;;  %v3350_v54 = vcombine.low %v415_v43, %v419_v44 }
 0x18d   :  { %2790 = vmatprep.subr.bf16.mxu0 %v3293_v55  ;;  %2919 = vmatprep.subr.bf16.mxu1 %v3295_v56  ;;  %v3357_v55 = vcombine.high %v422_v49, %v426_v50  ;;  %v3359_v56 = vcombine.high %v423_v51, %v427_v52 }
 0x190   :  { %2791 = vmatpush1.bf16.msra.mxu0 %v3292_v61  ;;  %2920 = vmatpush1.bf16.msra.mxu1 %v3294_v62  ;;  %v3356_v61 = vcombine.low %v422_v49, %v426_v50  ;;  %v3358_v62 = vcombine.low %v423_v51, %v427_v52 }
 0x191   :  { %2792 = vmatprep.subr.bf16.mxu0 %v3301_v63  ;;  %2921 = vmatprep.subr.bf16.mxu1 %v3303_v0  ;;  %v3365_v63 = vcombine.high %v430_v57, %v434_v58  ;;  %v3367_v0 = vcombine.high %v431_v59, %v435_v60 }
 0x194   :  { %2793 = vmatpush1.bf16.msra.mxu0 %v3300_v5  ;;  %2922 = vmatpush1.bf16.msra.mxu1 %v3302_v6  ;;  %v3364_v5 = vcombine.low %v430_v57, %v434_v58  ;;  %v3366_v6 = vcombine.low %v431_v59, %v435_v60 }
 0x195   :  { %2794 = vmatprep.subr.bf16.mxu0 %v3309_v7  ;;  %2923 = vmatprep.subr.bf16.mxu1 %v3311_v8  ;;  %v3373_v7 = vcombine.high %v438_v1, %v442_v2  ;;  %v3375_v8 = vcombine.high %v439_v3, %v443_v4 }
 0x198   :  { %2795 = vmatpush1.bf16.msra.mxu0 %v3308_v13  ;;  %2924 = vmatpush1.bf16.msra.mxu1 %v3310_v14  ;;  %v447_v13 = vshrl.u32 %v446_v12, 7 }
 0x199   :  { %2796 = vmatprep.subr.bf16.mxu0 %v3317_v15  ;;  %2925 = vmatprep.subr.bf16.mxu1 %v3319_v16  ;;  %v444_v15 = vld [vmem:[#allocation7] sm:$0xff] }
 0x19a   :  { %v448_v14 = vsub.s32 0, %v447_v13  ;;  %v456_v16 = vsub.s32 2, %v447_v13  ;;  %v452_v17 = vsub.s32 1, %v447_v13  ;;  %v460_v18 = vsub.s32 3, %v447_v13 }
 0x19b   :  { %v468_v41 = vsub.s32 5, %v447_v13  ;;  %v476_v42 = vsub.s32 7, %v447_v13 }
 0x19c   :  { %2797 = vmatpush1.bf16.msra.mxu0 %v3316_v21  ;;  %2926 = vmatpush1.bf16.msra.mxu1 %v3318_v22  ;;  %v449_v19 = vrot.slane %v444_v15, %v448_v14  ;;  %v457_v20 = vrot.slane %v444_v15, %v456_v16  ;;  %v453_v21 = vrot.slane %v444_v15, %v452_v17 }
 0x19d   :  { %2798 = vmatprep.subr.bf16.mxu0 %v3325_v23  ;;  %2927 = vmatprep.subr.bf16.mxu1 %v3327_v24  ;;  %v461_v22 = vrot.slane %v444_v15, %v460_v18 }
 0x1a0   :  { %2799 = vmatpush1.bf16.msra.mxu0 %v3324_v29  ;;  %2928 = vmatpush1.bf16.msra.mxu1 %v3326_v30 }
 0x1a1   :  { %2800 = vmatprep.subr.bf16.mxu0 %v3333_v31  ;;  %2929 = vmatprep.subr.bf16.mxu1 %v3335_v32 }
 0x1a4   :  { %2801 = vmatpush1.bf16.msra.mxu0 %v3332_v37  ;;  %2930 = vmatpush1.bf16.msra.mxu1 %v3334_v38 }
 0x1a5   :  { %2802 = vmatprep.subr.bf16.mxu0 %v3341_v39  ;;  %2931 = vmatprep.subr.bf16.mxu1 %v3343_v40  ;;  %v464_v39 = vsub.s32 4, %v447_v13  ;;  %v472_v40 = vsub.s32 6, %v447_v13 }
 0x1a7   :  { %v465_v43 = vrot.slane %v444_v15, %v464_v39  ;;  %v473_v44 = vrot.slane %v444_v15, %v472_v40 }
 0x1a8   :  { %2803 = vmatpush1.bf16.msra.mxu0 %v3340_v45  ;;  %2932 = vmatpush1.bf16.msra.mxu1 %v3342_v46  ;;  %v469_v45 = vrot.slane %v444_v15, %v468_v41  ;;  %v477_v46 = vrot.slane %v444_v15, %v476_v42 }
 0x1a9   :  { %2804 = vmatprep.subr.bf16.mxu0 %v3349_v47  ;;  %2933 = vmatprep.subr.bf16.mxu1 %v3351_v48 }
 0x1ac   :  { %2805 = vmatpush1.bf16.msra.mxu0 %v3348_v53  ;;  %2934 = vmatpush1.bf16.msra.mxu1 %v3350_v54 }
 0x1ad   :  { %2806 = vmatprep.subr.bf16.mxu0 %v3357_v55  ;;  %2935 = vmatprep.subr.bf16.mxu1 %v3359_v56 }
 0x1b0   :  { %2807 = vmatpush1.bf16.msra.mxu0 %v3356_v61  ;;  %2936 = vmatpush1.bf16.msra.mxu1 %v3358_v62 }
 0x1b1   :  { %2808 = vmatprep.subr.bf16.mxu0 %v3365_v63  ;;  %2937 = vmatprep.subr.bf16.mxu1 %v3367_v0 }
 0x1b4   :  { %2809 = vmatpush1.bf16.msra.mxu0 %v3364_v5  ;;  %2938 = vmatpush1.bf16.msra.mxu1 %v3366_v6 }
 0x1b5   :  { %2810 = vmatprep.subr.bf16.mxu0 %v3373_v7  ;;  %2939 = vmatprep.subr.bf16.mxu1 %v3375_v8 }
 0x1b8   :  { %2811 = vmatpush1.bf16.msra.mxu0 %v3372_v9  ;;  %2940 = vmatpush1.bf16.msra.mxu1 %v3374_v10 }
 0x1bb   :  { %2813 = vmatmul.mubr.bf16.vlgmr.msra.gmra.mrb[4].mxu0 %v3448_v11  ;;  %2942 = vmatmul.mubr.bf16.vlgmr.msra.gmra.mrb[4].mxu1 %v3448_v11 }
 0x1ce   :  { %v2556_v23 = vpop.f32.mrb[0].mxu0  ;;  %v2685_v25 = vpop.f32.mrb[0].mxu1 }
 0x1cf   :  { %v3376_v24 = vadd.f32 %v2556_v23, %v449_v19  ;;  %v2558_v26 = vpop.f32.mrb[1].mxu0  ;;  %v3380_v27 = vadd.f32 %v2685_v25, %v457_v20  ;;  %v2687_v29 = vpop.f32.mrb[1].mxu1 }
 0x1d0   :  { %v3377_v28 = vadd.f32 %v2558_v26, %v453_v21  ;;  %v2560_v30 = vpop.f32.mrb[2].mxu0  ;;  %v3381_v31 = vadd.f32 %v2687_v29, %v461_v22  ;;  %v2689_v33 = vpop.f32.mrb[2].mxu1 }
 0x1d1   :  { %2952 = vst [vmem:[#allocation8] sm:$0xff] %v3376_v24  ;;  %v3378_v32 = vadd.f32 %v2560_v30, %v449_v19  ;;  %v2562_v34 = vpop.f32.mrb[3].mxu0  ;;  %2954 = vst [vmem:[#allocation8 + $0x10] sm:$0xff] %v3380_v27  ;;  %v3382_v35 = vadd.f32 %v2689_v33, %v457_v20  ;;  %v2691_v37 = vpop.f32.mrb[3].mxu1 }
 0x1d2   :  { %2953 = vst [vmem:[#allocation8 + $0x8] sm:$0xff] %v3377_v28  ;;  %v3379_v36 = vadd.f32 %v2562_v34, %v453_v21  ;;  %2955 = vst [vmem:[#allocation8 + $0x18] sm:$0xff] %v3381_v31  ;;  %v3383_v38 = vadd.f32 %v2691_v37, %v461_v22 }
 0x1d3   :  { %2960 = vst [vmem:[#allocation8 + $0x40] sm:$0xff] %v3378_v32  ;;  %2962 = vst [vmem:[#allocation8 + $0x50] sm:$0xff] %v3382_v35 }
 0x1d4   :  { %2961 = vst [vmem:[#allocation8 + $0x48] sm:$0xff] %v3379_v36  ;;  %2963 = vst [vmem:[#allocation8 + $0x58] sm:$0xff] %v3383_v38 }
 0x28e   :  { %v2814_v47 = vpop.f32.mrb[4].mxu0  ;;  %v2943_v49 = vpop.f32.mrb[4].mxu1 }
 0x28f   :  { %v3384_v48 = vadd.f32 %v2814_v47, %v465_v43  ;;  %v2816_v50 = vpop.f32.mrb[5].mxu0  ;;  %v3388_v51 = vadd.f32 %v2943_v49, %v473_v44  ;;  %v2945_v53 = vpop.f32.mrb[5].mxu1 }
 0x290   :  { %v3385_v52 = vadd.f32 %v2816_v50, %v469_v45  ;;  %v2818_v54 = vpop.f32.mrb[6].mxu0  ;;  %v3389_v55 = vadd.f32 %v2945_v53, %v477_v46  ;;  %v2947_v57 = vpop.f32.mrb[6].mxu1 }
 0x291   :  { %2956 = vst [vmem:[#allocation8 + $0x20] sm:$0xff] %v3384_v48  ;;  %v3386_v56 = vadd.f32 %v2818_v54, %v465_v43  ;;  %v2820_v58 = vpop.f32.mrb[7].mxu0  ;;  %2958 = vst [vmem:[#allocation8 + $0x30] sm:$0xff] %v3388_v51  ;;  %v3390_v59 = vadd.f32 %v2947_v57, %v473_v44  ;;  %v2949_v61 = vpop.f32.mrb[7].mxu1 }
 0x292   :  { %2957 = vst [vmem:[#allocation8 + $0x28] sm:$0xff] %v3385_v52  ;;  %v3387_v60 = vadd.f32 %v2820_v58, %v469_v45  ;;  %2959 = vst [vmem:[#allocation8 + $0x38] sm:$0xff] %v3389_v55  ;;  %v3391_v62 = vadd.f32 %v2949_v61, %v477_v46 }
 0x293   :  { %2964 = vst [vmem:[#allocation8 + $0x60] sm:$0xff] %v3386_v56  ;;  %2966 = vst [vmem:[#allocation8 + $0x70] sm:$0xff] %v3390_v59 }
 0x294   :  { %2965 = vst [vmem:[#allocation8 + $0x68] sm:$0xff] %v3387_v60  ;;  %2967 = vst [vmem:[#allocation8 + $0x78] sm:$0xff] %v3391_v62 }
 0x295   :  { %3526 = shalt.err (!%p3523_p0)
}
 0x296   :  { %s3527_s27 = scalar_lea.hbm %s3624_s3, 2048 }
 0x297   :  { %p3528_p1 = scmp.ne.s32.totalorder %s3624_s3, %s3527_s27  ;;  %p3531_p2 = scmp.lt.u32.totalorder %s3527_s27, %s3624_s3 }
 0x299   :  { %p3533_p3 = pnand %p3531_p2, %p3528_p1 }
 0x29b   :  { %3536 = shalt.err (!%p3533_p3)
}
 0x29c   :  { %s3551_s5 = smov 1024   ;;  %s3552_s6 = smov 64  }
 0x29d   :  { %2979 = dma.vmem_to_hbm [thread:$0]  %s2974_s23, 2048, %s3624_s3, [#allocation4], %s3551_s5, %s3551_s5, %s3552_s6  }
 0x29e   :  { %3541 = dma.done.wait [#allocation4], 2048  }
 0x29f   :  { %3542 = vsyncadd [#allocation4], 4294965248 }
 0x2a0   :  { %2983 = vsyncpa [#allocation3], 1 }
 0x2a1   :  { %2984 = vsyncpa [#allocation6], 1 }
 0x2a2   :  { %2985 = vsyncpa [#allocation4], 1 }

</bundles_post_ra>
